<compile_context>
chip_gen: v5e
topology: v5e:2x2
jax: 0.10.0
libtpu: 0.0.40
codegen_flags: <defaults>
</compile_context>

<pallas_src>
import functools

import jax
import jax.numpy as jnp
from jax import lax
from jax.experimental import pallas as pl
from jax.experimental.pallas import tpu as pltpu

LANE = 128
MB = 1024 * 1024


def _round_up(x, m):
    return (x + m - 1) // m * m


def _downsamp_kernel(x_ref, w1_ref, b1_ref, w2_ref, b2_ref, o_ref, mid_ref, *,
                     nblk, ho1, ho2, wo1p, cpo, dot_dtype):
    """Fused MaxPool2d(2) + (Conv3x3 valid + BN + ReLU) x2 for `nblk` batch elements.

    x_ref  : (4, nblk*ho1*wo1p, 9*cin)   pre-pool im2col; axis 0 = the 4 pool positions
    w1_ref : (9*cin, cpo)                conv1 weights, taps packed into K, BN scale folded
    w2_ref : (3, 3*cpo, cpo)             conv2 weights, (kx, channel) packed into K per ky
    b1/b2  : (1, cpo)                    folded BN shift (conv bias + running stats)
    o_ref  : (nblk, ho2, wo1p, cpo)      lane-dense, width/channel padded output slab
    mid_ref: VMEM (nblk, ho1, wo1p+8, cpo) f32 conv1 activation (width-extended so conv2's
             kx shift is just a ref-load offset; extra columns feed discarded outputs only)
    """
    m1 = nblk * ho1 * wo1p
    m2 = nblk * ho2 * wo1p

    # One-time hygiene init of the padding columns of the persistent scratch (their values
    # only ever reach output columns that the wrapper slices away).
    @pl.when(pl.program_id(0) == 0)
    def _init_pad():
        mid_ref[:, :, wo1p:, :] = jnp.zeros((nblk, ho1, 8, cpo), jnp.float32)

    # --- MaxPool2d(2): elementwise max over the 4 pre-gathered pool positions (pure VPU,
    #     lane-dense).  The result *is* the conv1 im2col matrix.
    pooled = jnp.maximum(jnp.maximum(x_ref[0], x_ref[1]),
                         jnp.maximum(x_ref[2], x_ref[3]))               # (m1, 9*cin)

    # --- Conv1 (3x3 valid) as ONE K-packed matmul + folded-BN shift + ReLU (f32 epilogue).
    acc1 = jnp.dot(pooled.astype(dot_dtype), w1_ref[...],
                   preferred_element_type=jnp.float32)                  # (m1, cpo) f32
    mid = jnp.maximum(acc1 + b1_ref[...], 0.0)
    mid_ref[:, :, :wo1p, :] = mid.reshape(nblk, ho1, wo1p, cpo)         # tile-granular store

    # --- Conv2 (3x3 valid): ky -> tile-aligned row window of mid; kx -> ref-load offset;
    #     the 3 kx patches are lane-concatenated (128-aligned) so each ky is ONE dot with
    #     K = 3*cpo.  Accumulator initialized from the first dot.
    acc2 = None
    for ky in range(3):
        patch = jnp.concatenate(
            [mid_ref[:, ky:ky + ho2, kx:kx + wo1p, :].reshape(m2, cpo)
             for kx in range(3)],
            axis=1).astype(dot_dtype)                                   # (m2, 3*cpo)
        part = jnp.dot(patch, w2_ref[ky], preferred_element_type=jnp.float32)
        acc2 = part if acc2 is None else acc2 + part

    out = jnp.maximum(acc2 + b2_ref[...], 0.0)                          # f32 epilogue
    o_ref[...] = out.reshape(nblk, ho2, wo1p, cpo).astype(o_ref.dtype)


def _fold_bn(conv_bias, gamma, beta, mean, var, eps=1e-5):
    scale = gamma / jnp.sqrt(var + eps)
    shift = beta + (conv_bias - mean) * scale
    return scale.astype(jnp.float32), shift.astype(jnp.float32)


def _vmem_bytes(nblk, ho1, ho2, wo1p, k1, cpo, dot_itemsize):
    """Rough per-core working-set estimate (lane-padded VMEM tiles, double buffers)."""
    m1 = nblk * ho1 * wo1p
    m2 = nblk * ho2 * wo1p
    inp = 2 * 4 * m1 * _round_up(k1, LANE) * 4                # input block, double buffered
    wts = 2 * (_round_up(k1, 8) * cpo + 3 * 3 * cpo * cpo) * dot_itemsize
    bias = 2 * 2 * 8 * cpo * 4
    mid = nblk * ho1 * (wo1p + 8) * cpo * 4
    outb = 2 * m2 * cpo * 4
    return inp + wts + bias + mid + outb


def _auto_batch_block(n, ho1, ho2, wo1p, k1, cpo, dot_itemsize,
                      m_target=512, vmem_budget=24 * MB):
    """Largest divisor of n whose matmul M = nblk*ho1*wo1p stays near m_target and whose
    working set fits a v7x-safe VMEM budget."""
    best = 1
    for d in range(1, n + 1):
        if n % d:
            continue
        if d > 1 and d * ho1 * wo1p > m_target:
            continue
        if d > 1 and _vmem_bytes(d, ho1, ho2, wo1p, k1, cpo, dot_itemsize) > vmem_budget:
            continue
        best = d
    return best


def downsamp_forward(x_nchw, params, *, batch_block=None, use_bf16=False):
    """Pallas implementation of downSamp.forward (inference-mode BatchNorm).  NCHW in/out."""
    n, cin, h, w = x_nchw.shape
    assert h % 2 == 0 and w % 2 == 0, "MaxPool2d(2) requires even H, W"
    hp, wp = h // 2, w // 2
    assert hp >= 5 and wp >= 5, "two valid 3x3 convs require pooled spatial dims >= 5"
    ho1, wo1 = hp - 2, wp - 2
    ho2, wo2 = ho1 - 2, wo1 - 2
    wo1p = _round_up(wo1, 8)              # width pad -> all matrix<->plane reshapes tile-granular
    cout = params["w1"].shape[-1]
    cpo = _round_up(cout, LANE)
    k1 = 9 * cin
    dot_dtype = jnp.bfloat16 if use_bf16 else jnp.float32
    dot_itemsize = 2 if use_bf16 else 4

    if batch_block is None:
        batch_block = _auto_batch_block(n, ho1, ho2, wo1p, k1, cpo, dot_itemsize)
    assert n % batch_block == 0, "batch must be divisible by batch_block"
    nblk = batch_block
    m1blk = nblk * ho1 * wo1p

    # ---- One fused XLA rearrangement: NCHW -> pre-pool im2col with a dense lane axis.
    # cols[d, (b,i,j), (ky,kx,c)] = x[b, c, 2*(i+ky)+dy, 2*(j+kx)+dx],  d = 2*dy + dx.
    # The actual max (the pool) stays inside the kernel; keeping the input dtype (no f32
    # upcast here) keeps HBM bytes minimal if the caller feeds bf16.
    x_in = x_nchw if jnp.issubdtype(x_nchw.dtype, jnp.floating) else x_nchw.astype(jnp.float32)
    xw = x_in.reshape(n, cin, hp, 2, wp, 2).transpose(0, 2, 4, 3, 5, 1)   # (n,hp,wp,2,2,cin)
    cols = jnp.stack([xw[:, ky:ky + ho1, kx:kx + wo1]
                      for ky in range(3) for kx in range(3)], axis=3)     # (n,ho1,wo1,9,2,2,cin)
    if wo1p != wo1:
        cols = jnp.pad(cols, ((0, 0), (0, 0), (0, wo1p - wo1),
                              (0, 0), (0, 0), (0, 0), (0, 0)))
    cols = cols.transpose(4, 5, 0, 1, 2, 3, 6).reshape(4, n * ho1 * wo1p, k1)

    # ---- Fold BN (running stats) + conv bias: scale into the weights, shift as epilogue add.
    s1, b1 = _fold_bn(params["b1"], params["g1"], params["be1"], params["m1"], params["v1"])
    s2, b2 = _fold_bn(params["b2"], params["g2"], params["be2"], params["m2"], params["v2"])
    w1 = (params["w1"].astype(jnp.float32) * s1).reshape(k1, cout)        # K-packed (ky,kx,c)
    w2 = params["w2"].astype(jnp.float32) * s2                            # (3,3,cout,cout)

    w1_p = jnp.zeros((k1, cpo), dot_dtype).at[:, :cout].set(w1.astype(dot_dtype))
    w2_p = (jnp.zeros((3, 3, cpo, cpo), dot_dtype)
            .at[:, :, :cout, :cout].set(w2.astype(dot_dtype))
            .reshape(3, 3 * cpo, cpo))                                    # (kx,c) packed into K
    b1_p = jnp.zeros((1, cpo), jnp.float32).at[0, :cout].set(b1)
    b2_p = jnp.zeros((1, cpo), jnp.float32).at[0, :cout].set(b2)

    kernel = functools.partial(_downsamp_kernel, nblk=nblk, ho1=ho1, ho2=ho2,
                               wo1p=wo1p, cpo=cpo, dot_dtype=dot_dtype)

    # Explicit VMEM budget: >= 32 MiB (raises v5e's 16 MiB scoped default), <= 48 MiB so the
    # double-buffered pipeline stays alive under v7x's 64 MiB physical VMEM.
    need = _vmem_bytes(nblk, ho1, ho2, wo1p, k1, cpo, dot_itemsize)
    vmem_limit = int(min(max(32 * MB, 2 * need), 48 * MB))

    out_pad = pl.pallas_call(
        kernel,
        out_shape=jax.ShapeDtypeStruct((n, ho2, wo1p, cpo), jnp.float32),
        grid_spec=pltpu.PrefetchScalarGridSpec(
            num_scalar_prefetch=0,
            grid=(n // nblk,),
            in_specs=[
                pl.BlockSpec((4, m1blk, k1), lambda i: (0, i, 0)),
                pl.BlockSpec((k1, cpo), lambda i: (0, 0)),
                pl.BlockSpec((1, cpo), lambda i: (0, 0)),
                pl.BlockSpec((3, 3 * cpo, cpo), lambda i: (0, 0, 0)),
                pl.BlockSpec((1, cpo), lambda i: (0, 0)),
            ],
            out_specs=pl.BlockSpec((nblk, ho2, wo1p, cpo), lambda i: (i, 0, 0, 0)),
            scratch_shapes=[pltpu.VMEM((nblk, ho1, wo1p + 8, cpo), jnp.float32)],
        ),
        compiler_params=pltpu.CompilerParams(
            dimension_semantics=("parallel",),
            vmem_limit_bytes=vmem_limit,
        ),
    )(cols, w1_p, b1_p, w2_p, b2_p)

    # Drop the width/channel padding, back to NCHW like PyTorch.
    return jnp.transpose(out_pad[:, :, :wo2, :cout], (0, 3, 1, 2))


def reference_forward(x_nchw, params, eps=1e-5):
    """Pure-JAX reference (inference-mode BatchNorm), NCHW in/out."""
    x = jnp.transpose(x_nchw.astype(jnp.float32), (0, 2, 3, 1))
    n, h, w, cin = x.shape
    x = x.reshape(n, h // 2, 2, w // 2, 2, cin).max(axis=(2, 4))          # MaxPool2d(2)

    def conv_bn_relu(y, wgt, b, gamma, beta, mean, var):
        y = lax.conv_general_dilated(
            y, wgt, window_strides=(1, 1), padding="VALID",
            dimension_numbers=("NHWC", "HWIO", "NHWC")) + b
        y = (y - mean) / jnp.sqrt(var + eps) * gamma + beta
        return jnp.maximum(y, 0.0)

    y = conv_bn_relu(x, params["w1"], params["b1"], params["g1"],
                     params["be1"], params["m1"], params["v1"])
    y = conv_bn_relu(y, params["w2"], params["b2"], params["g2"],
                     params["be2"], params["m2"], params["v2"])
    return jnp.transpose(y, (0, 3, 1, 2))


def init_params(key, inch, outch):
    ks = jax.random.split(key, 12)
    return {
        "w1": 0.1 * jax.random.normal(ks[0], (3, 3, inch, outch), jnp.float32),
        "b1": 0.1 * jax.random.normal(ks[1], (outch,), jnp.float32),
        "g1": 1.0 + 0.1 * jax.random.normal(ks[2], (outch,), jnp.float32),
        "be1": 0.1 * jax.random.normal(ks[3], (outch,), jnp.float32),
        "m1": 0.1 * jax.random.normal(ks[4], (outch,), jnp.float32),
        "v1": 0.5 + jnp.abs(jax.random.normal(ks[5], (outch,), jnp.float32)),
        "w2": 0.1 * jax.random.normal(ks[6], (3, 3, outch, outch), jnp.float32),
        "b2": 0.1 * jax.random.normal(ks[7], (outch,), jnp.float32),
        "g2": 1.0 + 0.1 * jax.random.normal(ks[8], (outch,), jnp.float32),
        "be2": 0.1 * jax.random.normal(ks[9], (outch,), jnp.float32),
        "m2": 0.1 * jax.random.normal(ks[10], (outch,), jnp.float32),
        "v2": 0.5 + jnp.abs(jax.random.normal(ks[11], (outch,), jnp.float32)),
    }


if __name__ == "__main__":
    key = jax.random.PRNGKey(0)
    k_x, k_p = jax.random.split(key)

    N, INCH, OUTCH, H, W = 2, 4, 8, 16, 16
    x = jax.random.normal(k_x, (N, INCH, H, W), jnp.float32)              # NCHW, like PyTorch
    params = init_params(k_p, INCH, OUTCH)

    ref = jax.block_until_ready(reference_forward(x, params))

    # f32 path: validates the fused kernel against the pure-JAX reference.
    out = jax.block_until_ready(downsamp_forward(x, params))
    assert out.shape == (N, OUTCH, H // 2 - 4, W // 2 - 4), out.shape
    max_err = float(jnp.max(jnp.abs(out - ref)))
    assert jnp.allclose(out, ref, rtol=1e-4, atol=1e-4), max_err

    # bf16-matmul path (f32 accumulation + f32 epilogue): only input-rounding error,
    # so a looser tolerance is expected and acceptable.
    out_bf16 = jax.block_until_ready(downsamp_forward(x, params, use_bf16=True))
    max_err_bf16 = float(jnp.max(jnp.abs(out_bf16 - ref)))
    assert jnp.allclose(out_bf16, ref, rtol=1e-1, atol=1e-1), max_err_bf16

    print("KERNEL_OK")
</pallas_src>

<mosaic_0001>
module attributes {stable_mosaic.version = 11 : i64} {
  func.func @_downsamp_kernel(%arg0: i32, %arg1: memref<4x96x36xf32, #tpu.memory_space<vmem>>, %arg2: memref<36x128xf32, #tpu.memory_space<vmem>>, %arg3: memref<1x128xf32, #tpu.memory_space<vmem>>, %arg4: memref<3x384x128xf32, #tpu.memory_space<vmem>>, %arg5: memref<1x128xf32, #tpu.memory_space<vmem>>, %arg6: memref<2x4x8x128xf32, #tpu.memory_space<vmem>>, %arg7: memref<2x6x16x128xf32, #tpu.memory_space<vmem>>) attributes {dimension_semantics = [#tpu.dimension_semantics<parallel>], iteration_bounds = array<i64: 1>, scalar_prefetch = 0 : i64, scratch_operands = 1 : i64, tpu.core_type = #tpu.core_type<tc>, window_params = [{transform_indices = @transform_0, window_bounds = array<i64: 4, 96, 36>}, {pipeline_mode = #tpu.pipeline_mode<synchronous>, transform_indices = @transform_1, window_bounds = array<i64: 36, 128>}, {pipeline_mode = #tpu.pipeline_mode<synchronous>, transform_indices = @transform_2, window_bounds = array<i64: 1, 128>}, {pipeline_mode = #tpu.pipeline_mode<synchronous>, transform_indices = @transform_3, window_bounds = array<i64: 3, 384, 128>}, {pipeline_mode = #tpu.pipeline_mode<synchronous>, transform_indices = @transform_4, window_bounds = array<i64: 1, 128>}, {transform_indices = @transform_5, window_bounds = array<i64: 2, 4, 8, 128>}]} {
    %c0_i32 = arith.constant 0 : i32
    %0 = arith.cmpi eq, %arg0, %c0_i32 : i32
    %1 = arith.extui %0 : i1 to i32
    %c0_i32_0 = arith.constant 0 : i32
    %2 = arith.cmpi ne, %1, %c0_i32_0 : i32
    scf.if %2 {
      %cst_73 = arith.constant 0.000000e+00 : f32
      %62 = vector.broadcast %cst_73 : f32 to vector<2x6x8x128xf32>
      %c0_74 = arith.constant 0 : index
      %c0_75 = arith.constant 0 : index
      %c8 = arith.constant 8 : index
      %c0_76 = arith.constant 0 : index
      %63 = vector.load %arg7[%c0_74, %c0_75, %c8, %c0_76] : memref<2x6x16x128xf32, #tpu.memory_space<vmem>>, vector<2x6x8x128xf32>
      tpu.vector_store %arg7[%c0_74, %c0_75, %c8, %c0_76], %62 {strides = array<i32>} : memref<2x6x16x128xf32, #tpu.memory_space<vmem>>, vector<2x6x8x128xf32>,
    } else {
    }
    %c0 = arith.constant 0 : index
    %c0_1 = arith.constant 0 : index
    %c0_2 = arith.constant 0 : index
    %3 = vector.load %arg1[%c0, %c0_1, %c0_2] : memref<4x96x36xf32, #tpu.memory_space<vmem>>, vector<1x96x36xf32>
    %4 = vector.shape_cast %3 : vector<1x96x36xf32> to vector<96x36xf32>
    %c1 = arith.constant 1 : index
    %c0_3 = arith.constant 0 : index
    %c0_4 = arith.constant 0 : index
    %5 = vector.load %arg1[%c1, %c0_3, %c0_4] : memref<4x96x36xf32, #tpu.memory_space<vmem>>, vector<1x96x36xf32>
    %6 = vector.shape_cast %5 : vector<1x96x36xf32> to vector<96x36xf32>
    %7 = arith.maximumf %4, %6 : vector<96x36xf32>
    %c2 = arith.constant 2 : index
    %c0_5 = arith.constant 0 : index
    %c0_6 = arith.constant 0 : index
    %8 = vector.load %arg1[%c2, %c0_5, %c0_6] : memref<4x96x36xf32, #tpu.memory_space<vmem>>, vector<1x96x36xf32>
    %9 = vector.shape_cast %8 : vector<1x96x36xf32> to vector<96x36xf32>
    %c3 = arith.constant 3 : index
    %c0_7 = arith.constant 0 : index
    %c0_8 = arith.constant 0 : index
    %10 = vector.load %arg1[%c3, %c0_7, %c0_8] : memref<4x96x36xf32, #tpu.memory_space<vmem>>, vector<1x96x36xf32>
    %11 = vector.shape_cast %10 : vector<1x96x36xf32> to vector<96x36xf32>
    %12 = arith.maximumf %9, %11 : vector<96x36xf32>
    %13 = arith.maximumf %7, %12 : vector<96x36xf32>
    %c0_9 = arith.constant 0 : index
    %c0_10 = arith.constant 0 : index
    %14 = vector.load %arg2[%c0_9, %c0_10] : memref<36x128xf32, #tpu.memory_space<vmem>>, vector<36x128xf32>
    %cst = arith.constant dense<0.000000e+00> : vector<96x128xf32>
    %15 = tpu.matmul %13, %14, %cst {dimension_numbers = #tpu.dot_dimension_numbers<[1], [0], [0], [1], [0, 0, 1, 1], [], []>} : vector<96x36xf32>, vector<36x128xf32>, vector<96x128xf32> -> vector<96x128xf32>
    %c0_11 = arith.constant 0 : index
    %c0_12 = arith.constant 0 : index
    %16 = vector.load %arg3[%c0_11, %c0_12] : memref<1x128xf32, #tpu.memory_space<vmem>>, vector<1x128xf32>
    %17 = vector.broadcast %16 : vector<1x128xf32> to vector<96x128xf32>
    %18 = arith.addf %15, %17 : vector<96x128xf32>
    %cst_13 = arith.constant 0.000000e+00 : f32
    %19 = vector.broadcast %cst_13 : f32 to vector<96x128xf32>
    %20 = arith.maximumf %18, %19 : vector<96x128xf32>
    %21 = vector.shape_cast %20 : vector<96x128xf32> to vector<2x6x8x128xf32>
    %c0_14 = arith.constant 0 : index
    %c0_15 = arith.constant 0 : index
    %c0_16 = arith.constant 0 : index
    %c0_17 = arith.constant 0 : index
    %22 = vector.load %arg7[%c0_14, %c0_15, %c0_16, %c0_17] : memref<2x6x16x128xf32, #tpu.memory_space<vmem>>, vector<2x6x8x128xf32>
    tpu.vector_store %arg7[%c0_14, %c0_15, %c0_16, %c0_17], %21 {strides = array<i32>} : memref<2x6x16x128xf32, #tpu.memory_space<vmem>>, vector<2x6x8x128xf32>,
    %c0_18 = arith.constant 0 : index
    %c0_19 = arith.constant 0 : index
    %c0_20 = arith.constant 0 : index
    %c0_21 = arith.constant 0 : index
    %23 = vector.load %arg7[%c0_18, %c0_19, %c0_20, %c0_21] : memref<2x6x16x128xf32, #tpu.memory_space<vmem>>, vector<2x4x8x128xf32>
    %24 = vector.shape_cast %23 : vector<2x4x8x128xf32> to vector<64x128xf32>
    %c0_22 = arith.constant 0 : index
    %c0_23 = arith.constant 0 : index
    %c1_24 = arith.constant 1 : index
    %c0_25 = arith.constant 0 : index
    %25 = vector.load %arg7[%c0_22, %c0_23, %c1_24, %c0_25] : memref<2x6x16x128xf32, #tpu.memory_space<vmem>>, vector<2x4x8x128xf32>
    %26 = vector.shape_cast %25 : vector<2x4x8x128xf32> to vector<64x128xf32>
    %c0_26 = arith.constant 0 : index
    %c0_27 = arith.constant 0 : index
    %c2_28 = arith.constant 2 : index
    %c0_29 = arith.constant 0 : index
    %27 = vector.load %arg7[%c0_26, %c0_27, %c2_28, %c0_29] : memref<2x6x16x128xf32, #tpu.memory_space<vmem>>, vector<2x4x8x128xf32>
    %28 = vector.shape_cast %27 : vector<2x4x8x128xf32> to vector<64x128xf32>
    %29 = tpu.concatenate %24, %26, %28 in 1 : vector<64x128xf32>, vector<64x128xf32>, vector<64x128xf32> -> vector<64x384xf32>
    %c0_30 = arith.constant 0 : index
    %c0_31 = arith.constant 0 : index
    %c0_32 = arith.constant 0 : index
    %30 = vector.load %arg4[%c0_30, %c0_31, %c0_32] : memref<3x384x128xf32, #tpu.memory_space<vmem>>, vector<1x384x128xf32>
    %31 = vector.shape_cast %30 : vector<1x384x128xf32> to vector<384x128xf32>
    %cst_33 = arith.constant dense<0.000000e+00> : vector<64x128xf32>
    %32 = tpu.matmul %29, %31, %cst_33 {dimension_numbers = #tpu.dot_dimension_numbers<[1], [0], [0], [1], [0, 0, 1, 1], [], []>} : vector<64x384xf32>, vector<384x128xf32>, vector<64x128xf32> -> vector<64x128xf32>
    %c0_34 = arith.constant 0 : index
    %c1_35 = arith.constant 1 : index
    %c0_36 = arith.constant 0 : index
    %c0_37 = arith.constant 0 : index
    %33 = vector.load %arg7[%c0_34, %c1_35, %c0_36, %c0_37] : memref<2x6x16x128xf32, #tpu.memory_space<vmem>>, vector<2x4x8x128xf32>
    %34 = vector.shape_cast %33 : vector<2x4x8x128xf32> to vector<64x128xf32>
    %c0_38 = arith.constant 0 : index
    %c1_39 = arith.constant 1 : index
    %c1_40 = arith.constant 1 : index
    %c0_41 = arith.constant 0 : index
    %35 = vector.load %arg7[%c0_38, %c1_39, %c1_40, %c0_41] : memref<2x6x16x128xf32, #tpu.memory_space<vmem>>, vector<2x4x8x128xf32>
    %36 = vector.shape_cast %35 : vector<2x4x8x128xf32> to vector<64x128xf32>
    %c0_42 = arith.constant 0 : index
    %c1_43 = arith.constant 1 : index
    %c2_44 = arith.constant 2 : index
    %c0_45 = arith.constant 0 : index
    %37 = vector.load %arg7[%c0_42, %c1_43, %c2_44, %c0_45] : memref<2x6x16x128xf32, #tpu.memory_space<vmem>>, vector<2x4x8x128xf32>
    %38 = vector.shape_cast %37 : vector<2x4x8x128xf32> to vector<64x128xf32>
    %39 = tpu.concatenate %34, %36, %38 in 1 : vector<64x128xf32>, vector<64x128xf32>, vector<64x128xf32> -> vector<64x384xf32>
    %c1_46 = arith.constant 1 : index
    %c0_47 = arith.constant 0 : index
    %c0_48 = arith.constant 0 : index
    %40 = vector.load %arg4[%c1_46, %c0_47, %c0_48] : memref<3x384x128xf32, #tpu.memory_space<vmem>>, vector<1x384x128xf32>
    %41 = vector.shape_cast %40 : vector<1x384x128xf32> to vector<384x128xf32>
    %cst_49 = arith.constant dense<0.000000e+00> : vector<64x128xf32>
    %42 = tpu.matmul %39, %41, %cst_49 {dimension_numbers = #tpu.dot_dimension_numbers<[1], [0], [0], [1], [0, 0, 1, 1], [], []>} : vector<64x384xf32>, vector<384x128xf32>, vector<64x128xf32> -> vector<64x128xf32>
    %43 = arith.addf %32, %42 : vector<64x128xf32>
    %c0_50 = arith.constant 0 : index
    %c2_51 = arith.constant 2 : index
    %c0_52 = arith.constant 0 : index
    %c0_53 = arith.constant 0 : index
    %44 = vector.load %arg7[%c0_50, %c2_51, %c0_52, %c0_53] : memref<2x6x16x128xf32, #tpu.memory_space<vmem>>, vector<2x4x8x128xf32>
    %45 = vector.shape_cast %44 : vector<2x4x8x128xf32> to vector<64x128xf32>
    %c0_54 = arith.constant 0 : index
    %c2_55 = arith.constant 2 : index
    %c1_56 = arith.constant 1 : index
    %c0_57 = arith.constant 0 : index
    %46 = vector.load %arg7[%c0_54, %c2_55, %c1_56, %c0_57] : memref<2x6x16x128xf32, #tpu.memory_space<vmem>>, vector<2x4x8x128xf32>
    %47 = vector.shape_cast %46 : vector<2x4x8x128xf32> to vector<64x128xf32>
    %c0_58 = arith.constant 0 : index
    %c2_59 = arith.constant 2 : index
    %c2_60 = arith.constant 2 : index
    %c0_61 = arith.constant 0 : index
    %48 = vector.load %arg7[%c0_58, %c2_59, %c2_60, %c0_61] : memref<2x6x16x128xf32, #tpu.memory_space<vmem>>, vector<2x4x8x128xf32>
    %49 = vector.shape_cast %48 : vector<2x4x8x128xf32> to vector<64x128xf32>
    %50 = tpu.concatenate %45, %47, %49 in 1 : vector<64x128xf32>, vector<64x128xf32>, vector<64x128xf32> -> vector<64x384xf32>
    %c2_62 = arith.constant 2 : index
    %c0_63 = arith.constant 0 : index
    %c0_64 = arith.constant 0 : index
    %51 = vector.load %arg4[%c2_62, %c0_63, %c0_64] : memref<3x384x128xf32, #tpu.memory_space<vmem>>, vector<1x384x128xf32>
    %52 = vector.shape_cast %51 : vector<1x384x128xf32> to vector<384x128xf32>
    %cst_65 = arith.constant dense<0.000000e+00> : vector<64x128xf32>
    %53 = tpu.matmul %50, %52, %cst_65 {dimension_numbers = #tpu.dot_dimension_numbers<[1], [0], [0], [1], [0, 0, 1, 1], [], []>} : vector<64x384xf32>, vector<384x128xf32>, vector<64x128xf32> -> vector<64x128xf32>
    %54 = arith.addf %43, %53 : vector<64x128xf32>
    %c0_66 = arith.constant 0 : index
    %c0_67 = arith.constant 0 : index
    %55 = vector.load %arg5[%c0_66, %c0_67] : memref<1x128xf32, #tpu.memory_space<vmem>>, vector<1x128xf32>
    %56 = vector.broadcast %55 : vector<1x128xf32> to vector<64x128xf32>
    %57 = arith.addf %54, %56 : vector<64x128xf32>
    %cst_68 = arith.constant 0.000000e+00 : f32
    %58 = vector.broadcast %cst_68 : f32 to vector<64x128xf32>
    %59 = arith.maximumf %57, %58 : vector<64x128xf32>
    %60 = vector.shape_cast %59 : vector<64x128xf32> to vector<2x4x8x128xf32>
    %c0_69 = arith.constant 0 : index
    %c0_70 = arith.constant 0 : index
    %c0_71 = arith.constant 0 : index
    %c0_72 = arith.constant 0 : index
    %61 = vector.load %arg6[%c0_69, %c0_70, %c0_71, %c0_72] : memref<2x4x8x128xf32, #tpu.memory_space<vmem>>, vector<2x4x8x128xf32>
    tpu.vector_store %arg6[%c0_69, %c0_70, %c0_71, %c0_72], %60 {strides = array<i32>} : memref<2x4x8x128xf32, #tpu.memory_space<vmem>>, vector<2x4x8x128xf32>,
    return
  }
  func.func @transform_0(%arg0: i32) -> (i32, i32, i32) {
    %c0_i32 = arith.constant 0 : i32
    %c0_i32_0 = arith.constant 0 : i32
    %c0_i32_1 = arith.constant 0 : i32
    return %c0_i32, %arg0, %c0_i32_0 : i32, i32, i32
  }
  func.func @transform_1(%arg0: i32) -> (i32, i32) {
    %c0_i32 = arith.constant 0 : i32
    %c0_i32_0 = arith.constant 0 : i32
    %c0_i32_1 = arith.constant 0 : i32
    return %c0_i32, %c0_i32_0 : i32, i32
  }
  func.func @transform_2(%arg0: i32) -> (i32, i32) {
    %c0_i32 = arith.constant 0 : i32
    %c0_i32_0 = arith.constant 0 : i32
    %c0_i32_1 = arith.constant 0 : i32
    return %c0_i32, %c0_i32_0 : i32, i32
  }
  func.func @transform_3(%arg0: i32) -> (i32, i32, i32) {
    %c0_i32 = arith.constant 0 : i32
    %c0_i32_0 = arith.constant 0 : i32
    %c0_i32_1 = arith.constant 0 : i32
    %c0_i32_2 = arith.constant 0 : i32
    return %c0_i32, %c0_i32_0, %c0_i32_1 : i32, i32, i32
  }
  func.func @transform_4(%arg0: i32) -> (i32, i32) {
    %c0_i32 = arith.constant 0 : i32
    %c0_i32_0 = arith.constant 0 : i32
    %c0_i32_1 = arith.constant 0 : i32
    return %c0_i32, %c0_i32_0 : i32, i32
  }
  func.func @transform_5(%arg0: i32) -> (i32, i32, i32, i32) {
    %c0_i32 = arith.constant 0 : i32
    %c0_i32_0 = arith.constant 0 : i32
    %c0_i32_1 = arith.constant 0 : i32
    %c0_i32_2 = arith.constant 0 : i32
    return %arg0, %c0_i32, %c0_i32_0, %c0_i32_1 : i32, i32, i32, i32
  }
}

</mosaic_0001>

<bundles_post_ra>
// kernel: tpu_custom_call.1
= control target key start
LH: loop header
LB: loop body
LE: loop exit
PB: predicated region body
PF: predicated region fallthrough
CT: control target
= control target key end

     0   :  { %10 = vsyncpa [#allocation4], 0  ;;  %s1530_s0 = inlined_call_operand.vmem [shape: f32[4,96,36], index: 0, kind: input, shape index: {}]   ;;  %s1531_s1 = inlined_call_operand.vmem [shape: f32[36,128], index: 1, kind: input, shape index: {}]   ;;  %s1532_s2 = inlined_call_operand.vmem [shape: f32[1,128], index: 2, kind: input, shape index: {}]   ;;  %s1533_s3 = inlined_call_operand.hbm [shape: f32[3,384,128], index: 3, kind: input, shape index: {}]   ;;  %s1534_s4 = inlined_call_operand.vmem [shape: f32[1,128], index: 4, kind: input, shape index: {}]   ;;  %s1535_s5 = inlined_call_operand.hbm [shape: f32[2,4,8,128], index: 5, kind: output, shape index: {}]  }
   0x1   :  { %11 = vsyncpa [#allocation5], 0  ;;  %s22_s20 = sshll.u32 %s1533_s3, 4  ;;  %s1051_s21 = smov [#allocation3]   ;;  %s23_s20 = int_to_ptr.hbm [resolvable:$true] %s22_s20 }
   0x2   :  { %s24_s22 = sshll.u32 %s1051_s21, 4  ;;  %s1052_s23 = smov 128   ;;  %s25_s22 = int_to_ptr.vmem [resolvable:$true] %s24_s22 }
   0x3   :  { %s1053_s24 = smov 8  }
   0x4   :  { %30 = dma.hbm_to_vmem [thread:$0]  %s23_s20, 18432, %s25_s22, [#allocation4], %s1052_s23, %s1052_s23, %s1053_s24  }
   0x5   :  { %1047 = dma.done.wait [#allocation4], 18432  }
   0x6   :  { %1048 = vsyncadd [#allocation4], 4294948864  ;;  %vm186_vm0 = vcmask 1043456   ;;  %v144_v0 = vld [vmem:[%s1531_s1 + $0x20] sm:$0xf]  ;;  %v143_v1 = vld [vmem:[%s1531_s1 + $0x18] sm:$0xff] }
   0x7   :  { %947 = vmatpush.msk.msra.mxu0 %vm186_vm0, %v144_v0  ;;  %v142_v2 = vld [vmem:[%s1531_s1 + $0x10] sm:$0xff]  ;;  %v53_v3 = vld [vmem:[%s1530_s0] sm:$0xff]  ;;  %v141_v9 = vld [vmem:[%s1531_s1 + $0x8] sm:$0xff]  ;;  %vm149_vm1 = vcmask 293888   ;;  %s898_s10 = sshll.u32 %s1535_s5, 4  ;;  %s899_s10 = int_to_ptr.hbm [resolvable:$true] %s898_s10 }
   0x8   :  { %v911_v4 = vld [vmem:[%s1530_s0 + $0x60] sm:$0xff]  ;;  %v54_v12 = vld [vmem:[%s1530_s0 + $0x8] sm:$0xff]  ;;  %v55_v19 = vld [vmem:[%s1530_s0 + $0x10] sm:$0xff] }
   0x9   :  { %v923_v5 = vld [vmem:[%s1530_s0 + $0xc0] sm:$0xff]  ;;  %202 = vmatpush.msra.mxu0 %v143_v1  ;;  %v78_v7 = vmax.f32 %v53_v3, %v911_v4  ;;  %v912_v13 = vld [vmem:[%s1530_s0 + $0x68] sm:$0xff]  ;;  %v913_v20 = vld [vmem:[%s1530_s0 + $0x70] sm:$0xff] }
   0xa   :  { %v935_v6 = vld [vmem:[%s1530_s0 + $0x120] sm:$0xff]  ;;  %v924_v14 = vld [vmem:[%s1530_s0 + $0xc8] sm:$0xff]  ;;  %v79_v16 = vmax.f32 %v54_v12, %v912_v13  ;;  %v925_v21 = vld [vmem:[%s1530_s0 + $0xd0] sm:$0xff]  ;;  %v80_v23 = vmax.f32 %v55_v19, %v913_v20 }
   0xb   :  { %v116_v8 = vmax.f32 %v923_v5, %v935_v6  ;;  %203 = vmatpush.msra.mxu0 %v142_v2  ;;  %v140_v10 = vld [vmem:[%s1531_s1] sm:$0xff]  ;;  %v936_v15 = vld [vmem:[%s1530_s0 + $0x128] sm:$0xff]  ;;  %v937_v22 = vld [vmem:[%s1530_s0 + $0x130] sm:$0xff] }
   0xc   :  { %v117_v17 = vmax.f32 %v924_v14, %v936_v15  ;;  %v118_v24 = vmax.f32 %v925_v21, %v937_v22  ;;  %v56_v26 = vld [vmem:[%s1530_s0 + $0x18] sm:$0xff]  ;;  %v57_v33 = vld [vmem:[%s1530_s0 + $0x20] sm:$0xff]  ;;  %v58_v40 = vld [vmem:[%s1530_s0 + $0x28] sm:$0xff] }
   0xd   :  { %v128_v11 = vmax.f32 %v78_v7, %v116_v8  ;;  %204 = vmatpush.msra.mxu0 %v141_v9  ;;  %v914_v27 = vld [vmem:[%s1530_s0 + $0x78] sm:$0xff]  ;;  %v915_v34 = vld [vmem:[%s1530_s0 + $0x80] sm:$0xff]  ;;  %v916_v41 = vld [vmem:[%s1530_s0 + $0x88] sm:$0xff] }
   0xe   :  { %v129_v18 = vmax.f32 %v79_v16, %v117_v17  ;;  %v130_v25 = vmax.f32 %v80_v23, %v118_v24  ;;  %v926_v28 = vld [vmem:[%s1530_s0 + $0xd8] sm:$0xff]  ;;  %v81_v30 = vmax.f32 %v56_v26, %v914_v27  ;;  %v927_v35 = vld [vmem:[%s1530_s0 + $0xe0] sm:$0xff]  ;;  %v82_v37 = vmax.f32 %v57_v33, %v915_v34  ;;  %v928_v42 = vld [vmem:[%s1530_s0 + $0xe8] sm:$0xff] }
   0xf   :  { %205 = vmatpush.msra.mxu0 %v140_v10  ;;  %v938_v29 = vld [vmem:[%s1530_s0 + $0x138] sm:$0xff]  ;;  %v939_v36 = vld [vmem:[%s1530_s0 + $0x140] sm:$0xff]  ;;  %v940_v43 = vld [vmem:[%s1530_s0 + $0x148] sm:$0xff]  ;;  %v83_v44 = vmax.f32 %v58_v40, %v916_v41 }
  0x10   :  { %948 = vmatmul.msk.f32.vlgmr.msra.gmra.mxu0 %vm149_vm1, %v128_v11  ;;  %v119_v31 = vmax.f32 %v926_v28, %v938_v29  ;;  %v120_v38 = vmax.f32 %v927_v35, %v939_v36  ;;  %v121_v45 = vmax.f32 %v928_v42, %v940_v43  ;;  %v59_v47 = vld [vmem:[%s1530_s0 + $0x30] sm:$0xff]  ;;  %v60_v54 = vld [vmem:[%s1530_s0 + $0x38] sm:$0xff]  ;;  %v61_v61 = vld [vmem:[%s1530_s0 + $0x40] sm:$0xff] }
  0x11   :  { %v917_v48 = vld [vmem:[%s1530_s0 + $0x90] sm:$0xff]  ;;  %v918_v55 = vld [vmem:[%s1530_s0 + $0x98] sm:$0xff]  ;;  %v919_v62 = vld [vmem:[%s1530_s0 + $0xa0] sm:$0xff] }
  0x12   :  { %v131_v32 = vmax.f32 %v81_v30, %v119_v31  ;;  %v132_v39 = vmax.f32 %v82_v37, %v120_v38  ;;  %v133_v46 = vmax.f32 %v83_v44, %v121_v45  ;;  %v929_v49 = vld [vmem:[%s1530_s0 + $0xf0] sm:$0xff]  ;;  %v84_v51 = vmax.f32 %v59_v47, %v917_v48  ;;  %v930_v56 = vld [vmem:[%s1530_s0 + $0xf8] sm:$0xff]  ;;  %v931_v63 = vld [vmem:[%s1530_s0 + $0x100] sm:$0xff] }
  0x13   :  { %v941_v50 = vld [vmem:[%s1530_s0 + $0x150] sm:$0xff]  ;;  %v942_v57 = vld [vmem:[%s1530_s0 + $0x158] sm:$0xff]  ;;  %v85_v58 = vmax.f32 %v60_v54, %v918_v55  ;;  %v943_v0 = vld [vmem:[%s1530_s0 + $0x160] sm:$0xff]  ;;  %v86_v1 = vmax.f32 %v61_v61, %v919_v62 }
  0x14   :  { %v122_v52 = vmax.f32 %v929_v49, %v941_v50  ;;  %v123_v59 = vmax.f32 %v930_v56, %v942_v57  ;;  %v124_v2 = vmax.f32 %v931_v63, %v943_v0  ;;  %v380_v3 = vld [vmem:[#allocation3 + $0x1f8] sm:$0xff]  ;;  %v379_v5 = vld [vmem:[#allocation3 + $0x1f0] sm:$0xff]  ;;  %v378_v7 = vld [vmem:[#allocation3 + $0x1e8] sm:$0xff]  ;;  %v1054_v56 = vmov 0.0  }
  0x15   :  { %v396_v4 = vld [vmem:[#allocation3 + $0x278] sm:$0xff]  ;;  %413 = vmatpush.msra.mxu1 %v380_v3  ;;  %v395_v6 = vld [vmem:[#allocation3 + $0x270] sm:$0xff]  ;;  %v394_v8 = vld [vmem:[#allocation3 + $0x268] sm:$0xff]  ;;  %960 = vmatpush.msra.mxu3 %v380_v3  ;;  %42 = vst [vmem:[#allocation2 + $0x18] sm:$0xff] %v1054_v56 }
  0x16   :  { %v134_v53 = vmax.f32 %v84_v51, %v122_v52  ;;  %v135_v60 = vmax.f32 %v85_v58, %v123_v59  ;;  %454 = vmatpush.msra.mxu2 %v396_v4  ;;  %v700_v9 = vld [vmem:[#allocation3 + $0x378] sm:$0xff]  ;;  %v136_v10 = vmax.f32 %v86_v1, %v124_v2  ;;  %v62_v11 = vld [vmem:[%s1530_s0 + $0x48] sm:$0xff]  ;;  %v377_v12 = vld [vmem:[#allocation3 + $0x1e0] sm:$0xff]  ;;  %41 = vst [vmem:[#allocation2 + $0x8] sm:$0xff] %v1054_v56 }
  0x17   :  { %414 = vmatpush.msra.mxu1 %v379_v5  ;;  %v393_v13 = vld [vmem:[#allocation3 + $0x260] sm:$0xff]  ;;  %733 = vmatpush.msrb.mxu0 %v700_v9  ;;  %v920_v14 = vld [vmem:[%s1530_s0 + $0xa8] sm:$0xff]  ;;  %v376_v17 = vld [vmem:[#allocation3 + $0x1d8] sm:$0xff]  ;;  %43 = vst [vmem:[#allocation2 + $0x28] sm:$0xff] %v1054_v56 }
  0x18   :  { %949 = vmatmul.msk.f32.gmra.mxu0 %vm149_vm1, %v129_v18  ;;  %455 = vmatpush.msra.mxu2 %v395_v6  ;;  %v932_v15 = vld [vmem:[%s1530_s0 + $0x108] sm:$0xff]  ;;  %v392_v18 = vld [vmem:[#allocation3 + $0x258] sm:$0xff]  ;;  %v87_v19 = vmax.f32 %v62_v11, %v920_v14  ;;  %v63_v22 = vld [vmem:[%s1530_s0 + $0x50] sm:$0xff]  ;;  %44 = vst [vmem:[#allocation2 + $0x38] sm:$0xff] %v1054_v56 }
  0x19   :  { %961 = vmatpush.msra.mxu3 %v379_v5  ;;  %v944_v16 = vld [vmem:[%s1530_s0 + $0x168] sm:$0xff]  ;;  %415 = vmatpush.msra.mxu1 %v378_v7  ;;  %v921_v23 = vld [vmem:[%s1530_s0 + $0xb0] sm:$0xff]  ;;  %v64_v29 = vld [vmem:[%s1530_s0 + $0x58] sm:$0xff]  ;;  %45 = vst [vmem:[#allocation2 + $0x48] sm:$0xff] %v1054_v56 }
  0x1a   :  { %456 = vmatpush.msra.mxu2 %v394_v8  ;;  %v125_v20 = vmax.f32 %v932_v15, %v944_v16  ;;  %v933_v24 = vld [vmem:[%s1530_s0 + $0x110] sm:$0xff]  ;;  %v88_v26 = vmax.f32 %v63_v22, %v921_v23  ;;  %v922_v30 = vld [vmem:[%s1530_s0 + $0xb8] sm:$0xff]  ;;  %v374_v38 = vld [vmem:[#allocation3 + $0x1c8] sm:$0xff]  ;;  %46 = vst [vmem:[#allocation2 + $0x58] sm:$0xff] %v1054_v56 }
  0x1b   :  { %962 = vmatpush.msra.mxu3 %v378_v7  ;;  %416 = vmatpush.msra.mxu1 %v377_v12  ;;  %v934_v31 = vld [vmem:[%s1530_s0 + $0x118] sm:$0xff]  ;;  %v89_v33 = vmax.f32 %v64_v29, %v922_v30  ;;  %v375_v36 = vld [vmem:[#allocation3 + $0x1d0] sm:$0xff]  ;;  %v373_v40 = vld [vmem:[#allocation3 + $0x1c0] sm:$0xff]  ;;  %47 = vst [vmem:[#allocation2 + $0x68] sm:$0xff] %v1054_v56 }
  0x1c   :  { %457 = vmatpush.msra.mxu2 %v393_v13  ;;  %v137_v21 = vmax.f32 %v87_v19, %v125_v20  ;;  %v699_v37 = vld [vmem:[#allocation3 + $0x370] sm:$0xff]  ;;  %v697_v41 = vld [vmem:[#allocation3 + $0x360] sm:$0xff]  ;;  %v372_v42 = vld [vmem:[#allocation3 + $0x1b8] sm:$0xff]  ;;  %48 = vst [vmem:[#allocation2 + $0x78] sm:$0xff] %v1054_v56 }
  0x1d   :  { %963 = vmatpush.msra.mxu3 %v377_v12  ;;  %417 = vmatpush.msra.mxu1 %v376_v17  ;;  %v696_v43 = vld [vmem:[#allocation3 + $0x358] sm:$0xff]  ;;  %v391_v44 = vld [vmem:[#allocation3 + $0x250] sm:$0xff]  ;;  %v390_v47 = vld [vmem:[#allocation3 + $0x248] sm:$0xff]  ;;  %49 = vst [vmem:[#allocation2 + $0x88] sm:$0xff] %v1054_v56 }
  0x1e   :  { %458 = vmatpush.msra.mxu2 %v392_v18  ;;  %734 = vmatpush.msrb.mxu0 %v699_v37  ;;  %v371_v45 = vld [vmem:[#allocation3 + $0x1b0] sm:$0xff]  ;;  %v370_v48 = vld [vmem:[#allocation3 + $0x1a8] sm:$0xff]  ;;  %v389_v50 = vld [vmem:[#allocation3 + $0x240] sm:$0xff]  ;;  %50 = vst [vmem:[#allocation2 + $0x98] sm:$0xff] %v1054_v56 }
  0x1f   :  { %964 = vmatpush.msra.mxu3 %v376_v17  ;;  %418 = vmatpush.msra.mxu1 %v375_v36  ;;  %v694_v49 = vld [vmem:[#allocation3 + $0x348] sm:$0xff]  ;;  %v369_v51 = vld [vmem:[#allocation3 + $0x1a0] sm:$0xff]  ;;  %v368_v54 = vld [vmem:[#allocation3 + $0x198] sm:$0xff]  ;;  %51 = vst [vmem:[#allocation2 + $0xa8] sm:$0xff] %v1054_v56 }
  0x20   :  { %950 = vmatmul.msk.f32.gmra.mxu0 %vm149_vm1, %v130_v25  ;;  %v945_v25 = vld [vmem:[%s1530_s0 + $0x170] sm:$0xff]  ;;  %459 = vmatpush.msra.mxu2 %v391_v44  ;;  %v693_v52 = vld [vmem:[#allocation3 + $0x340] sm:$0xff]  ;;  %v692_v55 = vld [vmem:[#allocation3 + $0x338] sm:$0xff]  ;;  %52 = vst [vmem:[#allocation2 + $0xb8] sm:$0xff] %v1054_v56 }
  0x21   :  { %v126_v27 = vmax.f32 %v933_v24, %v945_v25  ;;  %965 = vmatpush.msra.mxu3 %v375_v36  ;;  %419 = vmatpush.msra.mxu1 %v374_v38  ;;  %v387_v57 = vld [vmem:[#allocation3 + $0x230] sm:$0xff]  ;;  %v366_v61 = vld [vmem:[#allocation3 + $0x188] sm:$0xff]  ;;  %v385_v63 = vld [vmem:[#allocation3 + $0x220] sm:$0xff] }
  0x22   :  { %460 = vmatpush.msra.mxu2 %v390_v47  ;;  %v367_v58 = vld [vmem:[#allocation3 + $0x190] sm:$0xff]  ;;  %v690_v62 = vld [vmem:[#allocation3 + $0x328] sm:$0xff]  ;;  %v365_v0 = vld [vmem:[#allocation3 + $0x180] sm:$0xff] }
  0x23   :  { %v138_v28 = vmax.f32 %v88_v26, %v126_v27  ;;  %966 = vmatpush.msra.mxu3 %v374_v38  ;;  %420 = vmatpush.msra.mxu1 %v373_v40  ;;  %v691_v59 = vld [vmem:[#allocation3 + $0x330] sm:$0xff]  ;;  %v689_v1 = vld [vmem:[#allocation3 + $0x320] sm:$0xff]  ;;  %v384_v2 = vld [vmem:[#allocation3 + $0x218] sm:$0xff] }
  0x24   :  { %461 = vmatpush.msra.mxu2 %v389_v50  ;;  %v306_v3 = vld [vmem:[#allocation3 + $0x78] sm:$0xff]  ;;  %v383_v5 = vld [vmem:[#allocation3 + $0x210] sm:$0xff]  ;;  %v382_v8 = vld [vmem:[#allocation3 + $0x208] sm:$0xff] }
  0x25   :  { %967 = vmatpush.msra.mxu3 %v373_v40  ;;  %421 = vmatpush.msra.mxu1 %v372_v42  ;;  %v688_v4 = vld [vmem:[#allocation3 + $0x318] sm:$0xff]  ;;  %v305_v6 = vld [vmem:[#allocation3 + $0x70] sm:$0xff]  ;;  %v304_v9 = vld [vmem:[#allocation3 + $0x68] sm:$0xff] }
  0x26   :  { %v687_v7 = vld [vmem:[#allocation3 + $0x310] sm:$0xff]  ;;  %v381_v11 = vld [vmem:[#allocation3 + $0x200] sm:$0xff]  ;;  %v302_v14 = vld [vmem:[#allocation3 + $0x58] sm:$0xff] }
  0x27   :  { %968 = vmatpush.msra.mxu3 %v372_v42  ;;  %422 = vmatpush.msra.mxu1 %v371_v45  ;;  %v303_v12 = vld [vmem:[#allocation3 + $0x60] sm:$0xff]  ;;  %v301_v15 = vld [vmem:[#allocation3 + $0x50] sm:$0xff]  ;;  %v300_v16 = vld [vmem:[#allocation3 + $0x48] sm:$0xff] }
  0x28   :  { %951 = vmatmul.msk.f32.gmra.mxu0 %vm149_vm1, %v131_v32  ;;  %v946_v32 = vld [vmem:[%s1530_s0 + $0x178] sm:$0xff]  ;;  %v685_v13 = vld [vmem:[#allocation3 + $0x300] sm:$0xff]  ;;  %v296_v23 = vld [vmem:[#allocation3 + $0x28] sm:$0xff] }
  0x29   :  { %v127_v34 = vmax.f32 %v934_v31, %v946_v32  ;;  %969 = vmatpush.msra.mxu3 %v371_v45  ;;  %423 = vmatpush.msra.mxu1 %v370_v48  ;;  %v299_v17 = vld [vmem:[#allocation3 + $0x40] sm:$0xff]  ;;  %v298_v19 = vld [vmem:[#allocation3 + $0x38] sm:$0xff]  ;;  %v292_v30 = vld [vmem:[#allocation3 + $0x8] sm:$0xff] }
  0x2a   :  { %v1266_v18 = vld [vmem:[%s1532_s2] ss:$0 sm:$0xff]  ;;  %v294_v26 = vld [vmem:[#allocation3 + $0x18] sm:$0xff]  ;;  %v411_v44 = vld [vmem:[#allocation3 + $0x2f0] sm:$0xff] }
  0x2b   :  { %v139_v35 = vmax.f32 %v89_v33, %v127_v34  ;;  %970 = vmatpush.msra.mxu3 %v370_v48  ;;  %424 = vmatpush.msra.mxu1 %v369_v51  ;;  %v295_v25 = vld [vmem:[#allocation3 + $0x20] sm:$0xff]  ;;  %v412_v42 = vld [vmem:[#allocation3 + $0x2f8] sm:$0xff]  ;;  %v321_v50 = vld [vmem:[#allocation3 + $0xf0] sm:$0xff] }
  0x2c   :  { %v291_v32 = vld [vmem:[#allocation3] sm:$0xff]  ;;  %v1304_v56 = vld [vmem:[#allocation3 + $0x470] sm:$0xff] }
  0x2d   :  { %971 = vmatpush.msra.mxu3 %v369_v51  ;;  %425 = vmatpush.msra.mxu1 %v368_v54  ;;  %v320_v51 = vld [vmem:[#allocation3 + $0xe8] sm:$0xff] }
  0x2f   :  { %972 = vmatpush.msra.mxu3 %v368_v54  ;;  %426 = vmatpush.msra.mxu1 %v367_v58 }
  0x30   :  { %952 = vmatmul.msk.f32.gmra.mxu0 %vm149_vm1, %v132_v39  ;;  %v698_v39 = vld [vmem:[#allocation3 + $0x368] sm:$0xff] }
  0x31   :  { %735 = vmatpush.msrb.mxu0 %v698_v39  ;;  %973 = vmatpush.msra.mxu3 %v367_v58  ;;  %v1308_v58 = vld [vmem:[#allocation3 + $0x468] sm:$0xff] }
  0x32   :  { %427 = vmatpush.msra.mxu1 %v366_v61 }
  0x33   :  { %736 = vmatpush.msrb.mxu0 %v697_v41  ;;  %974 = vmatpush.msra.mxu3 %v366_v61  ;;  %v322_v41 = vld [vmem:[#allocation3 + $0xf8] sm:$0xff]  ;;  %v319_v61 = vld [vmem:[#allocation3 + $0xe0] sm:$0xff] }
  0x34   :  { %428 = vmatpush.msra.mxu1 %v365_v0 }
  0x35   :  { %737 = vmatpush.msrb.mxu0 %v696_v43  ;;  %975 = vmatpush.msra.mxu3 %v365_v0  ;;  %v1316_v0 = vld [vmem:[#allocation3 + $0x460] sm:$0xff] }
  0x36   :  { %536 = vmatpush.msrb.mxu1 %v306_v3  ;;  %v1318_v3 = vld [vmem:[#allocation3 + $0x458] sm:$0xff] }
  0x37   :  { %495 = vmatpush.msrb.mxu3 %v412_v42  ;;  %v709_v42 = vld [vmem:[#allocation3 + $0x3c0] sm:$0xff] }
  0x38   :  { %953 = vmatmul.msk.f32.gmra.mxu0 %vm149_vm1, %v133_v46  ;;  %v695_v46 = vld [vmem:[#allocation3 + $0x350] sm:$0xff]  ;;  %537 = vmatpush.msrb.mxu1 %v305_v6  ;;  %v404_v6 = vld [vmem:[#allocation3 + $0x2b8] sm:$0xff] }
  0x39   :  { %738 = vmatpush.msrb.mxu0 %v695_v46  ;;  %496 = vmatpush.msrb.mxu3 %v411_v44  ;;  %v410_v46 = vld [vmem:[#allocation3 + $0x2e8] sm:$0xff]  ;;  %v309_v44 = vld [vmem:[#allocation3 + $0x90] sm:$0xff] }
  0x3a   :  { %538 = vmatpush.msrb.mxu1 %v304_v9  ;;  %v1325_v9 = vld [vmem:[#allocation3 + $0x450] sm:$0xff] }
  0x3b   :  { %739 = vmatpush.msrb.mxu0 %v694_v49  ;;  %497 = vmatpush.msrb.mxu3 %v410_v46  ;;  %v409_v49 = vld [vmem:[#allocation3 + $0x2e0] sm:$0xff] }
  0x3c   :  { %539 = vmatpush.msrb.mxu1 %v303_v12  ;;  %v714_v12 = vld [vmem:[#allocation3 + $0x3e8] sm:$0xff] }
  0x3d   :  { %740 = vmatpush.msrb.mxu0 %v693_v52  ;;  %v408_v52 = vld [vmem:[#allocation3 + $0x2d8] sm:$0xff]  ;;  %498 = vmatpush.msrb.mxu3 %v409_v49 }
  0x3e   :  { %540 = vmatpush.msrb.mxu1 %v302_v14  ;;  %v1329_v14 = vld [vmem:[#allocation3 + $0x448] sm:$0xff]  ;;  %v1355_v49 = vld [vmem:[#allocation3 + $0x418] sm:$0xff] }
  0x3f   :  { %741 = vmatpush.msrb.mxu0 %v692_v55  ;;  %v407_v55 = vld [vmem:[#allocation3 + $0x2d0] sm:$0xff]  ;;  %499 = vmatpush.msrb.mxu3 %v408_v52 }
  0x40   :  { %954 = vmatmul.msk.f32.gmra.mxu0 %vm149_vm1, %v134_v53  ;;  %v388_v53 = vld [vmem:[#allocation3 + $0x238] sm:$0xff]  ;;  %541 = vmatpush.msrb.mxu1 %v301_v15  ;;  %v315_v15 = vld [vmem:[#allocation3 + $0xc0] sm:$0xff] }
  0x41   :  { %462 = vmatpush.msra.mxu2 %v388_v53  ;;  %742 = vmatpush.msrb.mxu0 %v691_v59  ;;  %v1301_v53 = vld [vmem:[#allocation3 + $0x478] sm:$0xff] }
  0x42   :  { %542 = vmatpush.msrb.mxu1 %v300_v16  ;;  %500 = vmatpush.msrb.mxu3 %v407_v55  ;;  %v402_v16 = vld [vmem:[#allocation3 + $0x2a8] sm:$0xff]  ;;  %v338_v55 = vld [vmem:[#allocation3 + $0x178] sm:$0xff] }
  0x43   :  { %463 = vmatpush.msra.mxu2 %v387_v57  ;;  %743 = vmatpush.msrb.mxu0 %v690_v62  ;;  %v406_v62 = vld [vmem:[#allocation3 + $0x2c8] sm:$0xff] }
  0x44   :  { %543 = vmatpush.msrb.mxu1 %v299_v17  ;;  %501 = vmatpush.msrb.mxu3 %v406_v62  ;;  %v713_v17 = vld [vmem:[#allocation3 + $0x3e0] sm:$0xff]  ;;  %v706_v62 = vld [vmem:[#allocation3 + $0x3a8] sm:$0xff] }
  0x45   :  { %744 = vmatpush.msrb.mxu0 %v689_v1  ;;  %v405_v1 = vld [vmem:[#allocation3 + $0x2c0] sm:$0xff] }
  0x46   :  { %544 = vmatpush.msrb.mxu1 %v298_v19  ;;  %502 = vmatpush.msrb.mxu3 %v405_v1  ;;  %v314_v19 = vld [vmem:[#allocation3 + $0xb8] sm:$0xff] }
  0x47   :  { %745 = vmatpush.msrb.mxu0 %v688_v4 }
  0x48   :  { %955 = vmatmul.msk.f32.gmra.mxu0 %vm149_vm1, %v135_v60  ;;  %v386_v60 = vld [vmem:[#allocation3 + $0x228] sm:$0xff]  ;;  %503 = vmatpush.msrb.mxu3 %v404_v6 }
  0x49   :  { %464 = vmatpush.msra.mxu2 %v386_v60  ;;  %746 = vmatpush.msrb.mxu0 %v687_v7  ;;  %v715_v7 = vld [vmem:[#allocation3 + $0x3f0] sm:$0xff] }
  0x4b   :  { %465 = vmatpush.msra.mxu2 %v385_v63  ;;  %v318_v63 = vld [vmem:[#allocation3 + $0xd8] sm:$0xff] }
  0x4d   :  { %466 = vmatpush.msra.mxu2 %v384_v2  ;;  %v716_v2 = vld [vmem:[#allocation3 + $0x3f8] sm:$0xff] }
  0x4f   :  { %467 = vmatpush.msra.mxu2 %v383_v5  ;;  %v317_v5 = vld [vmem:[#allocation3 + $0xd0] sm:$0xff] }
  0x50   :  { %956 = vmatmul.msk.f32.gmra.mxu0 %vm149_vm1, %v136_v10  ;;  %v686_v10 = vld [vmem:[#allocation3 + $0x308] sm:$0xff] }
  0x51   :  { %468 = vmatpush.msra.mxu2 %v382_v8  ;;  %747 = vmatpush.msrb.mxu0 %v686_v10  ;;  %v316_v10 = vld [vmem:[#allocation3 + $0xc8] sm:$0xff] }
  0x53   :  { %469 = vmatpush.msra.mxu2 %v381_v11  ;;  %748 = vmatpush.msrb.mxu0 %v685_v13  ;;  %v403_v11 = vld [vmem:[#allocation3 + $0x2b0] sm:$0xff] }
  0x54   :  { %504 = vmatpush.msrb.mxu3 %v403_v11  ;;  %v335_v11 = vld [vmem:[#allocation3 + $0x160] sm:$0xff] }
  0x55   :  { %577 = vmatpush.msrb.mxu2 %v322_v41  ;;  %815 = vmatpush.msra.mxu0 %v1301_v53  ;;  %v398_v41 = vld [vmem:[#allocation3 + $0x288] sm:$0xff] }
  0x56   :  { %505 = vmatpush.msrb.mxu3 %v402_v16 }
  0x57   :  { %578 = vmatpush.msrb.mxu2 %v321_v50  ;;  %816 = vmatpush.msra.mxu0 %v1304_v56  ;;  %v308_v50 = vld [vmem:[#allocation3 + $0x88] sm:$0xff] }
  0x58   :  { %957 = vmatmul.msk.f32.gmra.mxu0 %vm149_vm1, %v137_v21  ;;  %v297_v21 = vld [vmem:[#allocation3 + $0x30] sm:$0xff] }
  0x59   :  { %545 = vmatpush.msrb.mxu1 %v297_v21  ;;  %579 = vmatpush.msrb.mxu2 %v320_v51  ;;  %v401_v21 = vld [vmem:[#allocation3 + $0x2a0] sm:$0xff] }
  0x5a   :  { %817 = vmatpush.msra.mxu0 %v1308_v58  ;;  %506 = vmatpush.msrb.mxu3 %v401_v21 }
  0x5b   :  { %546 = vmatpush.msrb.mxu1 %v296_v23  ;;  %580 = vmatpush.msrb.mxu2 %v319_v61  ;;  %v1337_v23 = vld [vmem:[#allocation3 + $0x438] sm:$0xff]  ;;  %v337_v61 = vld [vmem:[#allocation3 + $0x170] sm:$0xff] }
  0x5c   :  { %818 = vmatpush.msra.mxu0 %v1316_v0 }
  0x5d   :  { %547 = vmatpush.msrb.mxu1 %v295_v25  ;;  %581 = vmatpush.msrb.mxu2 %v318_v63  ;;  %v313_v25 = vld [vmem:[#allocation3 + $0xb0] sm:$0xff]  ;;  %v1371_v63 = vld [vmem:[#allocation3 + $0x408] sm:$0xff] }
  0x5e   :  { %819 = vmatpush.msra.mxu0 %v1318_v3 }
  0x5f   :  { %548 = vmatpush.msrb.mxu1 %v294_v26  ;;  %582 = vmatpush.msrb.mxu2 %v317_v5  ;;  %v400_v26 = vld [vmem:[#allocation3 + $0x298] sm:$0xff]  ;;  %v1375_v5 = vld [vmem:[#allocation3 + $0x400] sm:$0xff] }
  0x60   :  { %958 = vmatmul.msk.f32.gmra.mxu0 %vm149_vm1, %v138_v28  ;;  %v293_v28 = vld [vmem:[#allocation3 + $0x10] sm:$0xff]  ;;  %507 = vmatpush.msrb.mxu3 %v400_v26  ;;  %v328_v26 = vld [vmem:[#allocation3 + $0x128] sm:$0xff] }
  0x61   :  { %549 = vmatpush.msrb.mxu1 %v293_v28  ;;  %820 = vmatpush.msra.mxu0 %v1325_v9 }
  0x62   :  { %583 = vmatpush.msrb.mxu2 %v316_v10  ;;  %v336_v10 = vld [vmem:[#allocation3 + $0x168] sm:$0xff] }
  0x63   :  { %550 = vmatpush.msrb.mxu1 %v292_v30  ;;  %821 = vmatpush.msra.mxu0 %v1329_v14  ;;  %v312_v30 = vld [vmem:[#allocation3 + $0xa8] sm:$0xff] }
  0x64   :  { %584 = vmatpush.msrb.mxu2 %v315_v15 }
  0x65   :  { %551 = vmatpush.msrb.mxu1 %v291_v32  ;;  %v399_v32 = vld [vmem:[#allocation3 + $0x290] sm:$0xff] }
  0x66   :  { %585 = vmatpush.msrb.mxu2 %v314_v19  ;;  %508 = vmatpush.msrb.mxu3 %v399_v32  ;;  %v323_v32 = vld [vmem:[#allocation3 + $0x100] sm:$0xff] }
  0x68   :  { %959 = vmatmul.msk.f32.gmra.mxu0 %vm149_vm1, %v139_v35  ;;  %586 = vmatpush.msrb.mxu2 %v313_v25  ;;  %v329_v25 = vld [vmem:[#allocation3 + $0x130] sm:$0xff] }
  0x69   :  { %509 = vmatpush.msrb.mxu3 %v398_v41 }
  0x6a   :  { %587 = vmatpush.msrb.mxu2 %v312_v30 }
  0x8d   :  { %v207_v20 = vpop.f32.mrf.mxu0 }
  0x8e   :  { %v1269_v22 = vadd.f32 %v1266_v18, %v207_v20  ;;  %v1334_v20 = vld [vmem:[#allocation3 + $0x440] sm:$0xff] }
  0x8f   :  { %822 = vmatpush.msra.mxu0 %v1334_v20 }
  0x90   :  { %v243_v24 = vmax.f32 %v1269_v22, 0.0  ;;  %v712_v22 = vld [vmem:[#allocation3 + $0x3d8] sm:$0xff] }
  0x91   :  { %823 = vmatpush.msra.mxu0 %v1337_v23 }
  0x92   :  { %255 = vst [vmem:[#allocation2] sm:$0xff] %v243_v24 }
  0x95   :  { %v210_v27 = vpop.f32.mrf.mxu0 }
  0x96   :  { %v211_v29 = vadd.f32 %v1266_v18, %v210_v27  ;;  %v711_v27 = vld [vmem:[#allocation3 + $0x3d0] sm:$0xff] }
  0x98   :  { %v1275_v31 = vmax.f32 %v211_v29, 0.0  ;;  %v1341_v29 = vld [vmem:[#allocation3 + $0x430] sm:$0xff] }
  0x99   :  { %824 = vmatpush.msra.mxu0 %v1341_v29 }
  0x9a   :  { %256 = vst [vmem:[#allocation2 + $0x10] sm:$0xff] %v1275_v31  ;;  %429 = vmatmul.f32.vlgmr.msra.gmra.mxu1 %v1275_v31 }
  0x9b   :  { %774 = vmatpush.msra.mxu1 %v716_v2 }
  0x9d   :  { %v213_v33 = vpop.f32.mrf.mxu0  ;;  %775 = vmatpush.msra.mxu1 %v715_v7  ;;  %v704_v7 = vld [vmem:[#allocation3 + $0x398] sm:$0xff] }
  0x9e   :  { %v214_v34 = vadd.f32 %v1266_v18, %v213_v33  ;;  %v311_v33 = vld [vmem:[#allocation3 + $0xa0] sm:$0xff] }
  0x9f   :  { %776 = vmatpush.msra.mxu1 %v714_v12  ;;  %588 = vmatpush.msrb.mxu2 %v311_v33  ;;  %v702_v12 = vld [vmem:[#allocation3 + $0x388] sm:$0xff] }
  0xa0   :  { %v1280_v35 = vmax.f32 %v214_v34, 0.0  ;;  %v710_v34 = vld [vmem:[#allocation3 + $0x3c8] sm:$0xff] }
  0xa1   :  { %v1282_v36 = vld [vmem:[#allocation2 + $0x11] sm:$0xff]  ;;  %777 = vmatpush.msra.mxu1 %v713_v17 }
  0xa2   :  { %257 = vst [vmem:[#allocation2 + $0x20] sm:$0xff] %v1280_v35  ;;  %470 = vmatmul.f32.vlgmr.msra.gmra.mxu2 %v1282_v36  ;;  %432 = vmatmul.f32.gmra.mxu1 %v1280_v35 }
  0xa3   :  { %749 = vmatmul.f32.vlgmr.msrb.gmra.mxu0 %v1280_v35  ;;  %778 = vmatpush.msra.mxu1 %v712_v22  ;;  %v1399_v22 = vld [vmem:[#allocation2 + $0x12] sm:$0xff] }
  0xa5   :  { %v216_v37 = vpop.f32.mrf.mxu0  ;;  %779 = vmatpush.msra.mxu1 %v711_v27  ;;  %v327_v27 = vld [vmem:[#allocation3 + $0x120] sm:$0xff] }
  0xa6   :  { %v217_v38 = vadd.f32 %v1266_v18, %v216_v37  ;;  %v1347_v37 = vld [vmem:[#allocation3 + $0x428] sm:$0xff] }
  0xa7   :  { %780 = vmatpush.msra.mxu1 %v710_v34  ;;  %825 = vmatpush.msra.mxu0 %v1347_v37 }
  0xa8   :  { %v1289_v39 = vmax.f32 %v217_v38, 0.0  ;;  %v310_v38 = vld [vmem:[#allocation3 + $0x98] sm:$0xff] }
  0xa9   :  { %v1291_v40 = vld [vmem:[#allocation2 + $0x21] sm:$0xff]  ;;  %589 = vmatpush.msrb.mxu2 %v310_v38  ;;  %781 = vmatpush.msra.mxu1 %v709_v42 }
  0xaa   :  { %258 = vst [vmem:[#allocation2 + $0x30] sm:$0xff] %v1289_v39  ;;  %473 = vmatmul.f32.gmra.mxu2 %v1291_v40  ;;  %435 = vmatmul.f32.gmra.mxu1 %v1289_v39 }
  0xab   :  { %752 = vmatmul.f32.gmra.mxu0 %v1289_v39  ;;  %590 = vmatpush.msrb.mxu2 %v309_v44 }
  0xad   :  { %v219_v43 = vpop.f32.mrf.mxu0  ;;  %591 = vmatpush.msrb.mxu2 %v308_v50 }
  0xae   :  { %v220_v45 = vadd.f32 %v1266_v18, %v219_v43  ;;  %v1352_v43 = vld [vmem:[#allocation3 + $0x420] sm:$0xff] }
  0xaf   :  { %826 = vmatpush.msra.mxu0 %v1352_v43 }
  0xb0   :  { %v247_v47 = vmax.f32 %v220_v45, 0.0  ;;  %v397_v45 = vld [vmem:[#allocation3 + $0x280] sm:$0xff] }
  0xb1   :  { %v1298_v48 = vld [vmem:[#allocation2 + $0x31] sm:$0xff]  ;;  %510 = vmatpush.msrb.mxu3 %v397_v45  ;;  %827 = vmatpush.msra.mxu0 %v1355_v49 }
  0xb2   :  { %259 = vst [vmem:[#allocation2 + $0x40] sm:$0xff] %v247_v47  ;;  %476 = vmatmul.f32.gmra.mxu2 %v1298_v48  ;;  %438 = vmatmul.f32.gmra.mxu1 %v247_v47 }
  0xb3   :  { %755 = vmatmul.f32.gmra.mxu0 %v247_v47  ;;  %v708_v47 = vld [vmem:[#allocation3 + $0x3b8] sm:$0xff] }
  0xb4   :  { %782 = vmatpush.msra.mxu1 %v708_v47 }
  0xb5   :  { %v222_v54 = vpop.f32.mrf.mxu0 }
  0xb6   :  { %v223_v57 = vadd.f32 %v1266_v18, %v222_v54  ;;  %v307_v54 = vld [vmem:[#allocation3 + $0x80] sm:$0xff] }
  0xb7   :  { %592 = vmatpush.msrb.mxu2 %v307_v54 }
  0xb8   :  { %v248_v59 = vmax.f32 %v223_v57, 0.0  ;;  %v707_v57 = vld [vmem:[#allocation3 + $0x3b0] sm:$0xff] }
  0xb9   :  { %v1311_v60 = vld [vmem:[#allocation2 + $0x41] sm:$0xff]  ;;  %783 = vmatpush.msra.mxu1 %v707_v57  ;;  %976 = vmatpush.msra.mxu2 %v1301_v53  ;;  %v703_v53 = vld [vmem:[#allocation3 + $0x390] sm:$0xff] }
  0xba   :  { %260 = vst [vmem:[#allocation2 + $0x50] sm:$0xff] %v248_v59  ;;  %479 = vmatmul.f32.gmra.mxu2 %v1311_v60  ;;  %552 = vmatmul.f32.vlgmr.msrb.gmra.mxu1 %v243_v24 }
  0xbb   :  { %758 = vmatmul.f32.gmra.mxu0 %v248_v59  ;;  %v1367_v59 = vld [vmem:[#allocation3 + $0x410] sm:$0xff]  ;;  %784 = vmatpush.msra.mxu1 %v706_v62 }
  0xbc   :  { %828 = vmatpush.msra.mxu0 %v1367_v59  ;;  %977 = vmatpush.msra.mxu2 %v1304_v56 }
  0xbd   :  { %v225_v4 = vpop.f32.mrf.mxu0 }
  0xbe   :  { %v1322_v8 = vadd.f32 %v1266_v18, %v225_v4  ;;  %v705_v4 = vld [vmem:[#allocation3 + $0x3a0] sm:$0xff]  ;;  %829 = vmatpush.msra.mxu0 %v1371_v63  ;;  %978 = vmatpush.msra.mxu2 %v1308_v58  ;;  %v333_v58 = vld [vmem:[#allocation3 + $0x150] sm:$0xff] }
  0xbf   :  { %785 = vmatpush.msra.mxu1 %v705_v4 }
  0xc0   :  { %v249_v13 = vmax.f32 %v1322_v8, 0.0  ;;  %830 = vmatpush.msra.mxu0 %v1375_v5  ;;  %979 = vmatpush.msra.mxu2 %v1316_v0  ;;  %v701_v8 = vld [vmem:[#allocation3 + $0x380] sm:$0xff] }
  0xc1   :  { %786 = vmatpush.msra.mxu1 %v704_v7  ;;  %v671_v34 = vld [vmem:[#allocation2 + $0x51] sm:$0xff] }
  0xc2   :  { %261 = vst [vmem:[#allocation2 + $0x60] sm:$0xff] %v249_v13  ;;  %555 = vmatmul.f32.gmra.mxu1 %v1275_v31  ;;  %980 = vmatpush.msra.mxu2 %v1318_v3 }
  0xc3   :  { %787 = vmatpush.msra.mxu1 %v703_v53 }
  0xc4   :  { %981 = vmatpush.msra.mxu2 %v1325_v9  ;;  %v275_v9 = vld [vmem:[#allocation2 + $0x1] sm:$0xff] }
  0xc5   :  { %v228_v24 = vpop.f32.mrf.mxu0  ;;  %788 = vmatpush.msra.mxu1 %v702_v12 }
  0xc6   :  { %v229_v28 = vadd.f32 %v1266_v18, %v228_v24  ;;  %982 = vmatpush.msra.mxu2 %v1329_v14  ;;  %v332_v24 = vld [vmem:[#allocation3 + $0x148] sm:$0xff] }
  0xc7   :  { %789 = vmatpush.msra.mxu1 %v701_v8  ;;  %v1408_v14 = vld [vmem:[#allocation2 + $0x22] sm:$0xff] }
  0xc8   :  { %v1344_v31 = vmax.f32 %v229_v28, 0.0  ;;  %983 = vmatpush.msra.mxu2 %v1334_v20  ;;  %v330_v20 = vld [vmem:[#allocation3 + $0x138] sm:$0xff]  ;;  %v359_v28 = vld [vmem:[#allocation2 + $0x42] sm:$0xff] }
  0xc9   :  { %v279_v33 = vld [vmem:[#allocation2 + $0x61] sm:$0xff] }
  0xca   :  { %262 = vst [vmem:[#allocation2 + $0x70] sm:$0xff] %v1344_v31  ;;  %441 = vmatmul.f32.vlgmr.msra.gmra.mxu3 %v1344_v31  ;;  %558 = vmatmul.f32.gmra.mxu1 %v1280_v35 }
  0xcb   :  { %618 = vmatpush.msra.mxu3 %v338_v55  ;;  %984 = vmatpush.msra.mxu2 %v1337_v23  ;;  %v1415_v23 = vld [vmem:[#allocation2 + $0x32] sm:$0xff]  ;;  %v287_v55 = vld [vmem:[#allocation2 + $0x62] sm:$0xff] }
  0xcd   :  { %v231_v46 = vpop.f32.mrf.mxu0  ;;  %619 = vmatpush.msra.mxu3 %v337_v61  ;;  %985 = vmatpush.msra.mxu2 %v1341_v29  ;;  %v326_v29 = vld [vmem:[#allocation3 + $0x118] sm:$0xff] }
  0xce   :  { %v232_v35 = vadd.f32 %v1266_v18, %v231_v46  ;;  %v679_v46 = vld [vmem:[#allocation2 + $0x52] sm:$0xff] }
  0xcf   :  { %620 = vmatpush.msra.mxu3 %v336_v10  ;;  %986 = vmatpush.msra.mxu2 %v1347_v37 }
  0xd0   :  { %v1359_v51 = vmax.f32 %v232_v35, 0.0 }
  0xd1   :  { %v1362_v52 = vld [vmem:[#allocation2 + $0x71] sm:$0xff]  ;;  %621 = vmatpush.msra.mxu3 %v335_v11  ;;  %987 = vmatpush.msra.mxu2 %v1352_v43  ;;  %v283_v43 = vld [vmem:[#allocation2 + $0x2] sm:$0xff] }
  0xd2   :  { %263 = vst [vmem:[#allocation2 + $0x80] sm:$0xff] %v1359_v51  ;;  %482 = vmatmul.f32.gmra.mxu2 %v1362_v52  ;;  %444 = vmatmul.f32.gmra.mxu3 %v1359_v51  ;;  %v360_v30 = vld [vmem:[#allocation2 + $0x72] sm:$0xff] }
  0xd3   :  { %561 = vmatmul.f32.gmra.mxu1 %v1289_v39  ;;  %761 = vmatmul.f32.gmra.mxu0 %v1359_v51 }
  0xd4   :  { %988 = vmatpush.msra.mxu2 %v1355_v49 }
  0xd5   :  { %v234_v1 = vpop.f32.mrf.mxu0 }
  0xd6   :  { %v235_v2 = vadd.f32 %v1266_v18, %v234_v1  ;;  %989 = vmatpush.msra.mxu2 %v1367_v59 }
  0xd8   :  { %v252_v39 = vmax.f32 %v235_v2, 0.0  ;;  %990 = vmatpush.msra.mxu2 %v1371_v63 }
  0xd9   :  { %v1380_v6 = vld [vmem:[#allocation2 + $0x81] sm:$0xff] }
  0xda   :  { %264 = vst [vmem:[#allocation2 + $0x90] sm:$0xff] %v252_v39  ;;  %485 = vmatmul.f32.gmra.mxu2 %v1380_v6  ;;  %447 = vmatmul.f32.gmra.mxu3 %v252_v39 }
  0xdb   :  { %564 = vmatmul.f32.gmra.mxu1 %v249_v13  ;;  %764 = vmatmul.f32.gmra.mxu0 %v252_v39  ;;  %v334_v13 = vld [vmem:[#allocation3 + $0x158] sm:$0xff] }
  0xdc   :  { %622 = vmatpush.msra.mxu3 %v334_v13  ;;  %991 = vmatpush.msra.mxu2 %v1375_v5 }
  0xdd   :  { %v237_v56 = vpop.f32.mrf.mxu0 }
  0xde   :  { %v238_v15 = vadd.f32 %v1266_v18, %v237_v56  ;;  %623 = vmatpush.msra.mxu3 %v333_v58 }
  0xe0   :  { %v253_v16 = vmax.f32 %v238_v15, 0.0  ;;  %624 = vmatpush.msra.mxu3 %v332_v24 }
  0xe1   :  { %v1389_v17 = vld [vmem:[#allocation2 + $0x91] sm:$0xff] }
  0xe2   :  { %265 = vst [vmem:[#allocation2 + $0xa0] sm:$0xff] %v253_v16  ;;  %488 = vmatmul.f32.gmra.mxu2 %v1389_v17  ;;  %450 = vmatmul.f32.gmra.mxu3 %v253_v16  ;;  %v362_v37 = vld [vmem:[#allocation2 + $0x92] sm:$0xff] }
  0xe3   :  { %567 = vmatmul.f32.gmra.mxu1 %v1344_v31  ;;  %767 = vmatmul.f32.gmra.mxu0 %v253_v16  ;;  %v324_v31 = vld [vmem:[#allocation3 + $0x108] sm:$0xff] }
  0xe5   :  { %v240_v19 = vpop.f32.mrf.mxu0 }
  0xe6   :  { %v241_v0 = vadd.f32 %v1266_v18, %v240_v19  ;;  %v331_v18 = vld [vmem:[#allocation3 + $0x140] sm:$0xff] }
  0xe7   :  { %625 = vmatpush.msra.mxu3 %v331_v18 }
  0xe8   :  { %v254_v3 = vmax.f32 %v241_v0, 0.0 }
  0xe9   :  { %v1397_v21 = vld [vmem:[#allocation2 + $0xa1] sm:$0xff]  ;;  %626 = vmatpush.msra.mxu3 %v330_v20 }
  0xea   :  { %266 = vst [vmem:[#allocation2 + $0xb0] sm:$0xff] %v254_v3  ;;  %491 = vmatmul.f32.gmra.mxu2 %v1397_v21  ;;  %511 = vmatmul.f32.vlgmr.msrb.gmra.mxu3 %v1399_v22 }
  0xeb   :  { %570 = vmatmul.f32.gmra.mxu1 %v1359_v51  ;;  %770 = vmatmul.f32.gmra.mxu0 %v254_v3 }
  0xec   :  { %627 = vmatpush.msra.mxu3 %v329_v25 }
  0xee   :  { %628 = vmatpush.msra.mxu3 %v328_v26 }
  0xf0   :  { %629 = vmatpush.msra.mxu3 %v327_v27 }
  0xf1   :  { %v675_v47 = vld [vmem:[#allocation2 + $0xb1] sm:$0xff] }
  0xf2   :  { %593 = vmatmul.f32.vlgmr.msrb.gmra.mxu2 %v275_v9  ;;  %514 = vmatmul.f32.gmra.mxu3 %v1408_v14  ;;  %v683_v61 = vld [vmem:[#allocation2 + $0xb2] sm:$0xff] }
  0xf3   :  { %573 = vmatmul.f32.gmra.mxu1 %v252_v39  ;;  %831 = vmatmul.f32.vlgmr.msra.gmra.mxu0 %v1408_v14 }
  0xf4   :  { %630 = vmatpush.msra.mxu3 %v326_v29 }
  0xfa   :  { %596 = vmatmul.f32.gmra.mxu2 %v1282_v36  ;;  %517 = vmatmul.f32.gmra.mxu3 %v1415_v23  ;;  %v325_v36 = vld [vmem:[#allocation3 + $0x110] sm:$0xff] }
  0xfb   :  { %790 = vmatmul.f32.vlgmr.msra.gmra.mxu1 %v1291_v40  ;;  %834 = vmatmul.f32.gmra.mxu0 %v1415_v23 }
  0xfc   :  { %631 = vmatpush.msra.mxu3 %v325_v36 }
  0xfe   :  { %632 = vmatpush.msra.mxu3 %v324_v31 }
 0x100   :  { %633 = vmatpush.msra.mxu3 %v323_v32 }
 0x102   :  { %599 = vmatmul.f32.gmra.mxu2 %v1291_v40  ;;  %520 = vmatmul.f32.gmra.mxu3 %v359_v28  ;;  %v361_v40 = vld [vmem:[#allocation2 + $0x82] sm:$0xff] }
 0x103   :  { %793 = vmatmul.f32.gmra.mxu1 %v1298_v48  ;;  %837 = vmatmul.f32.gmra.mxu0 %v359_v28 }
 0x10a   :  { %602 = vmatmul.f32.gmra.mxu2 %v1298_v48  ;;  %523 = vmatmul.f32.gmra.mxu3 %v360_v30  ;;  %v363_v48 = vld [vmem:[#allocation2 + $0xa2] sm:$0xff] }
 0x10b   :  { %796 = vmatmul.f32.gmra.mxu1 %v1311_v60 }
 0x112   :  { %605 = vmatmul.f32.gmra.mxu2 %v279_v33  ;;  %526 = vmatmul.f32.gmra.mxu3 %v361_v40 }
 0x113   :  { %799 = vmatmul.f32.gmra.mxu1 %v671_v34 }
 0x117   :  { %v430_v38 = vpop.f32.mrf.mxu1 }
 0x11a   :  { %608 = vmatmul.f32.gmra.mxu2 %v1362_v52  ;;  %529 = vmatmul.f32.gmra.mxu3 %v362_v37 }
 0x11b   :  { %802 = vmatmul.f32.gmra.mxu1 %v1380_v6 }
 0x11f   :  { %v433_v42 = vpop.f32.mrf.mxu1 }
 0x120   :  { %v750_v4 = vpop.f32.mrf.mxu0 }
 0x122   :  { %611 = vmatmul.f32.gmra.mxu2 %v1380_v6  ;;  %532 = vmatmul.f32.gmra.mxu3 %v363_v48 }
 0x123   :  { %805 = vmatmul.f32.gmra.mxu1 %v1389_v17 }
 0x125   :  { %v471_v60 = vpop.f32.mrf.mxu2 }
 0x126   :  { %v1431_v41 = vadd.f32 %v471_v60, %v430_v38 }
 0x127   :  { %v436_v49 = vpop.f32.mrf.mxu1 }
 0x128   :  { %v753_v10 = vpop.f32.mrf.mxu0 }
 0x12a   :  { %614 = vmatmul.f32.gmra.mxu2 %v1389_v17  ;;  %634 = vmatmul.f32.vlgmr.msra.gmra.mxu3 %v283_v43 }
 0x12b   :  { %808 = vmatmul.f32.gmra.mxu1 %v1397_v21 }
 0x12d   :  { %v474_v44 = vpop.f32.mrf.mxu2 }
 0x12e   :  { %v1435_v45 = vadd.f32 %v474_v44, %v433_v42 }
 0x12f   :  { %v439_v51 = vpop.f32.mrf.mxu1 }
 0x130   :  { %v756_v17 = vpop.f32.mrf.mxu0 }
 0x132   :  { %840 = vmatmul.f32.vlgmr.msra.gmra.mxu2 %v679_v46  ;;  %637 = vmatmul.f32.gmra.mxu3 %v1399_v22 }
 0x133   :  { %811 = vmatmul.f32.gmra.mxu1 %v675_v47 }
 0x135   :  { %v477_v35 = vpop.f32.mrf.mxu2 }
 0x136   :  { %v1438_v50 = vadd.f32 %v477_v35, %v436_v49  ;;  %v1489_v49 = vld [vmem:[%s1534_s4] ss:$0 sm:$0xff]  ;;  %s1055_s4 = smov [#allocation6]  }
 0x137   :  { %v553_v57 = vpop.f32.mrf.mxu1  ;;  %s896_s7 = sshll.u32 %s1055_s4, 4  ;;  %s897_s7 = int_to_ptr.vmem [resolvable:$true] %s896_s7 }
 0x138   :  { %v1456_v0 = vpop.f32.mrf.mxu0 }
 0x13a   :  { %843 = vmatmul.f32.gmra.mxu2 %v361_v40  ;;  %640 = vmatmul.f32.gmra.mxu3 %v1408_v14 }
 0x13d   :  { %v480_v52 = vpop.f32.mrf.mxu2 }
 0x13e   :  { %v1441_v54 = vadd.f32 %v480_v52, %v439_v51 }
 0x13f   :  { %v556_v1 = vpop.f32.mrf.mxu1 }
 0x142   :  { %846 = vmatmul.f32.gmra.mxu2 %v362_v37  ;;  %643 = vmatmul.f32.gmra.mxu3 %v1415_v23 }
 0x147   :  { %v559_v7 = vpop.f32.mrf.mxu1 }
 0x14a   :  { %849 = vmatmul.f32.gmra.mxu2 %v363_v48  ;;  %646 = vmatmul.f32.gmra.mxu3 %v287_v55 }
 0x14d   :  { %v442_v59 = vpop.f32.mrf.mxu3 }
 0x150   :  { %v1450_v12 = vpop.f32.mrf.mxu1  ;;  %v1460_v24 = vpop.f32.mrf.mxu0 }
 0x152   :  { %852 = vmatmul.f32.gmra.mxu2 %v683_v61  ;;  %649 = vmatmul.f32.gmra.mxu3 %v360_v30 }
 0x155   :  { %v483_v62 = vpop.f32.mrf.mxu2  ;;  %v445_v63 = vpop.f32.mrf.mxu3 }
 0x156   :  { %v1444_v2 = vadd.f32 %v483_v62, %v442_v59 }
 0x158   :  { %v1454_v13 = vpop.f32.mrf.mxu1  ;;  %v1464_v20 = vpop.f32.mrf.mxu0 }
 0x15a   :  { %652 = vmatmul.f32.gmra.mxu3 %v361_v40 }
 0x15d   :  { %v486_v5 = vpop.f32.mrf.mxu2  ;;  %v448_v39 = vpop.f32.mrf.mxu3 }
 0x15e   :  { %v1446_v6 = vadd.f32 %v486_v5, %v445_v63 }
 0x160   :  { %v1458_v22 = vpop.f32.mrf.mxu1  ;;  %v1468_v27 = vpop.f32.mrf.mxu0 }
 0x162   :  { %655 = vmatmul.f32.gmra.mxu3 %v362_v37 }
 0x165   :  { %v489_v53 = vpop.f32.mrf.mxu2  ;;  %v451_v11 = vpop.f32.mrf.mxu3 }
 0x166   :  { %v1448_v56 = vadd.f32 %v489_v53, %v448_v39 }
 0x168   :  { %v1462_v14 = vpop.f32.mrf.mxu1  ;;  %v1478_v32 = vpop.f32.mrf.mxu0 }
 0x16d   :  { %v492_v15 = vpop.f32.mrf.mxu2  ;;  %v512_v16 = vpop.f32.mrf.mxu3 }
 0x16e   :  { %v1452_v8 = vadd.f32 %v492_v15, %v451_v11  ;;  %v513_v40 = vadd.f32 %v512_v16, %v1431_v41 }
 0x170   :  { %v1466_v26 = vpop.f32.mrf.mxu1  ;;  %v832_v38 = vpop.f32.mrf.mxu0  ;;  %v554_v48 = vadd.f32 %v553_v57, %v513_v40 }
 0x175   :  { %v594_v58 = vpop.f32.mrf.mxu2  ;;  %v515_v19 = vpop.f32.mrf.mxu3 }
 0x176   :  { %v595_v42 = vadd.f32 %v594_v58, %v554_v48  ;;  %v516_v44 = vadd.f32 %v515_v19, %v1435_v45 }
 0x178   :  { %v791_v36 = vpop.f32.mrf.mxu1  ;;  %v557_v52 = vadd.f32 %v556_v1, %v516_v44  ;;  %v835_v59 = vpop.f32.mrf.mxu0 }
 0x179   :  { %v792_v60 = vadd.f32 %v791_v36, %v750_v4 }
 0x17b   :  { %v833_v46 = vadd.f32 %v832_v38, %v792_v60 }
 0x17d   :  { %v597_v3 = vpop.f32.mrf.mxu2  ;;  %v518_v21 = vpop.f32.mrf.mxu3 }
 0x17e   :  { %v598_v61 = vadd.f32 %v597_v3, %v557_v52  ;;  %v519_v45 = vadd.f32 %v518_v21, %v1438_v50 }
 0x180   :  { %v794_v34 = vpop.f32.mrf.mxu1  ;;  %v560_v53 = vadd.f32 %v559_v7, %v519_v45  ;;  %v838_v19 = vpop.f32.mrf.mxu0 }
 0x181   :  { %v795_v55 = vadd.f32 %v794_v34, %v753_v10 }
 0x183   :  { %v836_v4 = vadd.f32 %v835_v59, %v795_v55 }
 0x185   :  { %v600_v18 = vpop.f32.mrf.mxu2  ;;  %v521_v9 = vpop.f32.mrf.mxu3 }
 0x186   :  { %v601_v1 = vadd.f32 %v600_v18, %v560_v53  ;;  %v522_v3 = vadd.f32 %v521_v9, %v1441_v54 }
 0x188   :  { %v797_v35 = vpop.f32.mrf.mxu1  ;;  %v563_v21 = vadd.f32 %v1450_v12, %v522_v3 }
 0x189   :  { %v798_v11 = vadd.f32 %v797_v35, %v756_v17 }
 0x18b   :  { %v839_v40 = vadd.f32 %v838_v19, %v798_v11 }
 0x18d   :  { %v603_v25 = vpop.f32.mrf.mxu2  ;;  %v524_v23 = vpop.f32.mrf.mxu3 }
 0x18e   :  { %v604_v7 = vadd.f32 %v603_v25, %v563_v21 }
 0x190   :  { %v800_v15 = vpop.f32.mrf.mxu1 }
 0x191   :  { %v801_v17 = vadd.f32 %v800_v15, %v1456_v0 }
 0x195   :  { %v1470_v28 = vpop.f32.mrf.mxu2  ;;  %v1472_v29 = vpop.f32.mrf.mxu3 }
 0x198   :  { %v803_v48 = vpop.f32.mrf.mxu1 }
 0x199   :  { %v804_v25 = vadd.f32 %v803_v48, %v1460_v24 }
 0x19d   :  { %v1474_v30 = vpop.f32.mrf.mxu2  ;;  %v1476_v31 = vpop.f32.mrf.mxu3 }
 0x1a5   :  { %v1480_v33 = vpop.f32.mrf.mxu3  ;;  %v1483_v37 = vpop.f32.mrf.mxu2 }
 0x1a6   :  { %v534_v15 = vadd.f32 %v1480_v33, %v1452_v8 }
 0x1ad   :  { %v635_v43 = vpop.f32.mrf.mxu3  ;;  %v1491_v41 = vpop.f32.mrf.mxu2 }
 0x1ae   :  { %v636_v47 = vadd.f32 %v635_v43, %v595_v42  ;;  %v525_v43 = vadd.f32 %v524_v23, %v1444_v2  ;;  %v806_v23 = vpop.f32.mrf.mxu1 }
 0x1b0   :  { %v856_v51 = vadd.f32 %v833_v46, %v636_v47  ;;  %v566_v46 = vadd.f32 %v1454_v13, %v525_v43 }
 0x1b2   :  { %v868_v57 = vadd.f32 %v1489_v49, %v856_v51  ;;  %v607_v12 = vadd.f32 %v1470_v28, %v566_v46  ;;  %v528_v51 = vadd.f32 %v1472_v29, %v1446_v6  ;;  %v807_v28 = vadd.f32 %v806_v23, %v1464_v20 }
 0x1b4   :  { %v876_v62 = vmax.f32 %v868_v57, 0.0  ;;  %v569_v59 = vadd.f32 %v1458_v22, %v528_v51 }
 0x1b5   :  { %v638_v63 = vpop.f32.mrf.mxu3  ;;  %v841_v58 = vpop.f32.mrf.mxu2 }
 0x1b6   :  { %884 = vst [vmem:[#allocation6] sm:$0xff] %v876_v62  ;;  %v639_v5 = vadd.f32 %v638_v63, %v598_v61  ;;  %v842_v44 = vadd.f32 %v841_v58, %v801_v17  ;;  %v610_v61 = vadd.f32 %v1474_v30, %v569_v59  ;;  %v531_v63 = vadd.f32 %v1476_v31, %v1448_v56 }
 0x1b8   :  { %v857_v39 = vadd.f32 %v836_v4, %v639_v5  ;;  %v809_v4 = vpop.f32.mrf.mxu1 }
 0x1b9   :  { %v810_v30 = vadd.f32 %v809_v4, %v1468_v27 }
 0x1ba   :  { %v869_v16 = vadd.f32 %v1489_v49, %v857_v39  ;;  %v572_v39 = vadd.f32 %v1462_v14, %v531_v63 }
 0x1bc   :  { %v877_v10 = vmax.f32 %v869_v16, 0.0  ;;  %v613_v53 = vadd.f32 %v1483_v37, %v572_v39 }
 0x1bd   :  { %v641_v36 = vpop.f32.mrf.mxu3  ;;  %v844_v42 = vpop.f32.mrf.mxu2 }
 0x1be   :  { %885 = vst [vmem:[#allocation6 + $0x8] sm:$0xff] %v877_v10  ;;  %v642_v34 = vadd.f32 %v641_v36, %v601_v1  ;;  %v845_v52 = vadd.f32 %v844_v42, %v804_v25  ;;  %v575_v1 = vadd.f32 %v1466_v26, %v534_v15 }
 0x1c0   :  { %v858_v50 = vadd.f32 %v839_v40, %v642_v34  ;;  %v812_v58 = vpop.f32.mrf.mxu1  ;;  %v616_v19 = vadd.f32 %v1491_v41, %v575_v1 }
 0x1c1   :  { %v813_v37 = vadd.f32 %v812_v58, %v1478_v32 }
 0x1c2   :  { %v870_v38 = vadd.f32 %v1489_v49, %v858_v50 }
 0x1c4   :  { %v878_v60 = vmax.f32 %v870_v38, 0.0 }
 0x1c5   :  { %v644_v18 = vpop.f32.mrf.mxu3  ;;  %v847_v55 = vpop.f32.mrf.mxu2 }
 0x1c6   :  { %886 = vst [vmem:[#allocation6 + $0x10] sm:$0xff] %v878_v60  ;;  %v645_v54 = vadd.f32 %v644_v18, %v604_v7  ;;  %v848_v6 = vadd.f32 %v847_v55, %v807_v28 }
 0x1c8   :  { %v859_v9 = vadd.f32 %v842_v44, %v645_v54 }
 0x1ca   :  { %v871_v47 = vadd.f32 %v1489_v49, %v859_v9 }
 0x1cc   :  { %v879_v35 = vmax.f32 %v871_v47, 0.0 }
 0x1cd   :  { %v647_v0 = vpop.f32.mrf.mxu3  ;;  %v850_v5 = vpop.f32.mrf.mxu2 }
 0x1ce   :  { %887 = vst [vmem:[#allocation6 + $0x18] sm:$0xff] %v879_v35  ;;  %v648_v2 = vadd.f32 %v647_v0, %v607_v12  ;;  %v851_v56 = vadd.f32 %v850_v5, %v810_v30 }
 0x1d0   :  { %v860_v57 = vadd.f32 %v845_v52, %v648_v2 }
 0x1d2   :  { %v872_v13 = vadd.f32 %v1489_v49, %v860_v57 }
 0x1d4   :  { %v880_v24 = vmax.f32 %v872_v13, 0.0 }
 0x1d5   :  { %v650_v62 = vpop.f32.mrf.mxu3  ;;  %v853_v10 = vpop.f32.mrf.mxu2 }
 0x1d6   :  { %888 = vst [vmem:[#allocation6 + $0x20] sm:$0xff] %v880_v24  ;;  %v651_v29 = vadd.f32 %v650_v62, %v610_v61  ;;  %v854_v3 = vadd.f32 %v853_v10, %v813_v37 }
 0x1d8   :  { %v861_v45 = vadd.f32 %v848_v6, %v651_v29 }
 0x1da   :  { %v873_v22 = vadd.f32 %v1489_v49, %v861_v45 }
 0x1dc   :  { %v881_v20 = vmax.f32 %v873_v22, 0.0 }
 0x1dd   :  { %v653_v11 = vpop.f32.mrf.mxu3 }
 0x1de   :  { %889 = vst [vmem:[#allocation6 + $0x28] sm:$0xff] %v881_v20  ;;  %v654_v31 = vadd.f32 %v653_v11, %v613_v53 }
 0x1e0   :  { %v862_v16 = vadd.f32 %v851_v56, %v654_v31 }
 0x1e2   :  { %v874_v14 = vadd.f32 %v1489_v49, %v862_v16 }
 0x1e4   :  { %v882_v27 = vmax.f32 %v874_v14, 0.0 }
 0x1e5   :  { %v656_v36 = vpop.f32.mrf.mxu3 }
 0x1e6   :  { %890 = vst [vmem:[#allocation6 + $0x30] sm:$0xff] %v882_v27  ;;  %v657_v40 = vadd.f32 %v656_v36, %v616_v19 }
 0x1e8   :  { %v863_v8 = vadd.f32 %v854_v3, %v657_v40 }
 0x1ea   :  { %v875_v26 = vadd.f32 %v1489_v49, %v863_v8 }
 0x1ec   :  { %v883_v33 = vmax.f32 %v875_v26, 0.0 }
 0x1ee   :  { %891 = vst [vmem:[#allocation6 + $0x38] sm:$0xff] %v883_v33 }
 0x1ef   :  { %904 = dma.vmem_to_hbm [thread:$0]  %s897_s7, 1024, %s899_s10, [#allocation5], %s1052_s23, %s1052_s23, %s1053_s24  }
 0x1f0   :  { %1049 = dma.done.wait [#allocation5], 1024  }
 0x1f1   :  { %1050 = vsyncadd [#allocation5], 4294966272 }
 0x1f2   :  { %909 = vsyncpa [#allocation4], 1 }
 0x1f3   :  { %910 = vsyncpa [#allocation5], 1 }

</bundles_post_ra>
